<compile_context>
chip_gen: v5e
topology: v5e:2x2
jax: 0.10.0
libtpu: 0.0.40
codegen_flags: <defaults>
</compile_context>

<pallas_src>
import functools

import jax
import jax.numpy as jnp
from jax import lax
from jax.experimental import pallas as pl
from jax.experimental.pallas import tpu as pltpu


# --------------------------------------------------------------------------
# Fused kernel: block1 -> block2 -> sequence mean-pool
# --------------------------------------------------------------------------
def _log_encoder_kernel(
        x_ref,
        wqkv1_ref, bqkv1_ref, wo1_ref, bo1_ref, w11_ref, b11_ref, w21_ref, b21_ref,
        wqkv2_ref, bqkv2_ref, wo2_ref, bo2_ref, w12_ref, b12_ref, w22_ref, b22_ref,
        o_ref, *, batch, seq, num_heads):
    """x_ref: (B*S, H) flattened activations.  o_ref: (B, H) pooled output.

    Per block: wqkv (H, 3H) effective q/k/v+in-proj weight (scale folded into
    the Q columns), bqkv (1, 3H), wo/bo MHA out-proj, w1/b1/w2/b2 FFN.
    """
    B, S = batch, seq
    H = o_ref.shape[-1]
    hd = H // num_heads

    def transformer_block(xf, wqkv_ref, bqkv_ref, wo_ref, bo_ref,
                          w1_ref, b1_ref, w2_ref, b2_ref):
        # Fused (q/k/v Linear  @  MHA in-proj): one (B*S, H) x (H, 3H) matmul.
        qkv = (jnp.dot(xf, wqkv_ref[...], preferred_element_type=jnp.float32)
               + bqkv_ref[...])                                  # (B*S, 3H)
        wo = wo_ref[...]                                         # (H, H)

        attn_rows = []
        for b in range(B):                      # static unroll, B is tiny
            rows = qkv[b * S:(b + 1) * S]       # (S, 3H) aligned sublane slice
            acc = jnp.zeros((S, H), jnp.float32)
            for h in range(num_heads):          # static unroll
                qh = rows[:, h * hd:(h + 1) * hd]                   # (S, hd)
                kh = rows[:, H + h * hd:H + (h + 1) * hd]           # (S, hd)
                vh = rows[:, 2 * H + h * hd:2 * H + (h + 1) * hd]   # (S, hd)
                # scores = qh @ kh^T without materializing a transpose.
                s = lax.dot_general(qh, kh, (((1,), (1,)), ((), ())),
                                    preferred_element_type=jnp.float32)  # (S, S)
                s = s - jnp.max(s, axis=-1, keepdims=True)
                p = jnp.exp(s)
                p = p / jnp.sum(p, axis=-1, keepdims=True)
                ctx = jnp.dot(p, vh, preferred_element_type=jnp.float32)  # (S, hd)
                # Out-projection folded per head (no lane-dim concat):
                #   concat_h(ctx_h) @ Wo == sum_h ctx_h @ Wo[h*hd:(h+1)*hd, :]
                acc = acc + jnp.dot(ctx, wo[h * hd:(h + 1) * hd, :],
                                    preferred_element_type=jnp.float32)
            attn_rows.append(acc + bo_ref[...])
        attn = jnp.concatenate(attn_rows, axis=0)                # (B*S, H)

        # Feed-forward: Linear -> ReLU -> Linear over the whole flat batch.
        h1 = jnp.maximum(
            jnp.dot(attn, w1_ref[...], preferred_element_type=jnp.float32)
            + b1_ref[...], 0.0)
        return (jnp.dot(h1, w2_ref[...], preferred_element_type=jnp.float32)
                + b2_ref[...])

    y = transformer_block(x_ref[...], wqkv1_ref, bqkv1_ref, wo1_ref, bo1_ref,
                          w11_ref, b11_ref, w21_ref, b21_ref)
    y = transformer_block(y, wqkv2_ref, bqkv2_ref, wo2_ref, bo2_ref,
                          w12_ref, b12_ref, w22_ref, b22_ref)

    # Fused sequence mean-pool epilogue (== AdaptiveAvgPool1d(1) over seq).
    pooled = [jnp.mean(y[b * S:(b + 1) * S], axis=0, keepdims=True)
              for b in range(B)]
    o_ref[...] = jnp.concatenate(pooled, axis=0).astype(o_ref.dtype)


# --------------------------------------------------------------------------
# Wrapper
# --------------------------------------------------------------------------
_BLOCK_PARAM_ORDER = ("wqkv", "bqkv", "wo", "bo", "w1", "b1", "w2", "b2")


def log_encoder(x, block1, block2, num_heads):
    """x: (B, S, H) float32; block{1,2}: dicts from compose_block_params."""
    B, S, H = x.shape
    xf = x.reshape(B * S, H)   # flatten outside the kernel (free XLA reshape)
    args = [xf]
    args += [block1[k] for k in _BLOCK_PARAM_ORDER]
    args += [block2[k] for k in _BLOCK_PARAM_ORDER]
    kernel = functools.partial(_log_encoder_kernel, batch=B, seq=S,
                               num_heads=num_heads)
    vmem = pl.BlockSpec(memory_space=pltpu.MemorySpace.VMEM)
    return pl.pallas_call(
        kernel,
        out_shape=jax.ShapeDtypeStruct((B, H), jnp.float32),
        in_specs=[vmem] * len(args),
        out_specs=vmem,
    )(*args)


# --------------------------------------------------------------------------
# Parameter construction (synthetic init laid out like the PyTorch module)
# --------------------------------------------------------------------------
def make_raw_block_params(key, hidden_dim, dff):
    """nn.Linear-style weights: (out_features, in_features)."""
    ks = jax.random.split(key, 14)
    scale = 0.05

    def w(k, shape):
        return jax.random.normal(k, shape, dtype=jnp.float32) * scale

    H = hidden_dim
    return dict(
        wq=w(ks[0], (H, H)), bq=w(ks[1], (H,)),
        wk=w(ks[2], (H, H)), bk=w(ks[3], (H,)),
        wv=w(ks[4], (H, H)), bv=w(ks[5], (H,)),
        w_in=w(ks[6], (3 * H, H)), b_in=w(ks[7], (3 * H,)),   # MHA in_proj
        w_out=w(ks[8], (H, H)), b_out=w(ks[9], (H,)),         # MHA out_proj
        w1=w(ks[10], (dff, H)), b1=w(ks[11], (dff,)),
        w2=w(ks[12], (H, dff)), b2=w(ks[13], (H,)),
    )


def compose_block_params(raw, hidden_dim, num_heads):
    """Pre-compose q/k/v Linear with the MHA in-projection on the host:
         (x @ Wl^T + bl) @ Win^T + bin  ==  x @ Weff + beff
    and fold the 1/sqrt(head_dim) softmax scale into the Q columns.
    Exact algebra (only f32 rounding differs from the reference)."""
    H = hidden_dim
    hd = H // num_heads
    q_scale = 1.0 / (hd ** 0.5)

    def eff(wl, bl, win, bin_):
        return wl.T @ win.T, bl @ win.T + bin_

    wq_e, bq_e = eff(raw["wq"], raw["bq"], raw["w_in"][:H], raw["b_in"][:H])
    wk_e, bk_e = eff(raw["wk"], raw["bk"], raw["w_in"][H:2 * H],
                     raw["b_in"][H:2 * H])
    wv_e, bv_e = eff(raw["wv"], raw["bv"], raw["w_in"][2 * H:],
                     raw["b_in"][2 * H:])
    wq_e, bq_e = wq_e * q_scale, bq_e * q_scale

    return dict(
        wqkv=jnp.concatenate([wq_e, wk_e, wv_e], axis=1),    # (H, 3H)
        bqkv=jnp.concatenate([bq_e, bk_e, bv_e])[None, :],   # (1, 3H)
        wo=raw["w_out"].T, bo=raw["b_out"][None, :],         # (H, H), (1, H)
        w1=raw["w1"].T, b1=raw["b1"][None, :],               # (H, dff), (1, dff)
        w2=raw["w2"].T, b2=raw["b2"][None, :],               # (dff, H), (1, H)
    )


# --------------------------------------------------------------------------
# Pure-JAX reference mirroring the PyTorch module (for a tolerance check)
# --------------------------------------------------------------------------
def _reference_block(x, p, num_heads):
    B, S, H = x.shape
    hd = H // num_heads
    sc = 1.0 / (hd ** 0.5)
    lin = lambda v, w, b: v @ w.T + b
    q = lin(x, p["wq"], p["bq"])
    k = lin(x, p["wk"], p["bk"])
    v = lin(x, p["wv"], p["bv"])
    qp = lin(q, p["w_in"][:H], p["b_in"][:H]) * sc
    kp = lin(k, p["w_in"][H:2 * H], p["b_in"][H:2 * H])
    vp = lin(v, p["w_in"][2 * H:], p["b_in"][2 * H:])
    split = lambda t: t.reshape(B, S, num_heads, hd).transpose(0, 2, 1, 3)
    qh, kh, vh = split(qp), split(kp), split(vp)
    s = jnp.einsum("bhqd,bhkd->bhqk", qh, kh)
    a = jax.nn.softmax(s, axis=-1)
    ctx = jnp.einsum("bhqk,bhkd->bhqd", a, vh)
    ctx = ctx.transpose(0, 2, 1, 3).reshape(B, S, H)
    attn = lin(ctx, p["w_out"], p["b_out"])
    h1 = jax.nn.relu(lin(attn, p["w1"], p["b1"]))
    return lin(h1, p["w2"], p["b2"])


def log_encoder_reference(x, raw1, raw2, num_heads):
    x = _reference_block(x, raw1, num_heads)
    x = _reference_block(x, raw2, num_heads)
    return jnp.mean(x, axis=1)


# --------------------------------------------------------------------------
if __name__ == "__main__":
    B, S = 2, 8                  # batch, sequence length
    hidden_dim, dff, heads = 32, 64, 4

    root = jax.random.PRNGKey(0)
    kx, k1, k2 = jax.random.split(root, 3)

    x = jax.random.normal(kx, (B, S, hidden_dim), dtype=jnp.float32)
    raw1 = make_raw_block_params(k1, hidden_dim, dff)
    raw2 = make_raw_block_params(k2, hidden_dim, dff)
    p1 = compose_block_params(raw1, hidden_dim, heads)
    p2 = compose_block_params(raw2, hidden_dim, heads)

    out = log_encoder(x, p1, p2, heads)
    out = jax.block_until_ready(out)

    assert out.shape == (B, hidden_dim), out.shape
    assert bool(jnp.all(jnp.isfinite(out)))

    ref = log_encoder_reference(x, raw1, raw2, heads)
    assert jnp.allclose(out, ref, rtol=2e-2, atol=2e-3), (
        float(jnp.max(jnp.abs(out - ref))))

    print("KERNEL_OK")
</pallas_src>

<mosaic_0001>
module attributes {stable_mosaic.version = 11 : i64} {
  func.func @_log_encoder_kernel(%arg0: memref<16x32xf32, #tpu.memory_space<vmem>>, %arg1: memref<32x96xf32, #tpu.memory_space<vmem>>, %arg2: memref<1x96xf32, #tpu.memory_space<vmem>>, %arg3: memref<32x32xf32, #tpu.memory_space<vmem>>, %arg4: memref<1x32xf32, #tpu.memory_space<vmem>>, %arg5: memref<32x64xf32, #tpu.memory_space<vmem>>, %arg6: memref<1x64xf32, #tpu.memory_space<vmem>>, %arg7: memref<64x32xf32, #tpu.memory_space<vmem>>, %arg8: memref<1x32xf32, #tpu.memory_space<vmem>>, %arg9: memref<32x96xf32, #tpu.memory_space<vmem>>, %arg10: memref<1x96xf32, #tpu.memory_space<vmem>>, %arg11: memref<32x32xf32, #tpu.memory_space<vmem>>, %arg12: memref<1x32xf32, #tpu.memory_space<vmem>>, %arg13: memref<32x64xf32, #tpu.memory_space<vmem>>, %arg14: memref<1x64xf32, #tpu.memory_space<vmem>>, %arg15: memref<64x32xf32, #tpu.memory_space<vmem>>, %arg16: memref<1x32xf32, #tpu.memory_space<vmem>>, %arg17: memref<2x32xf32, #tpu.memory_space<vmem>>) attributes {dimension_semantics = [], scalar_prefetch = 0 : i64, scratch_operands = 0 : i64, tpu.core_type = #tpu.core_type<tc>} {
    %c0 = arith.constant 0 : index
    %c0_0 = arith.constant 0 : index
    %0 = vector.load %arg0[%c0, %c0_0] : memref<16x32xf32, #tpu.memory_space<vmem>>, vector<16x32xf32>
    %c0_1 = arith.constant 0 : index
    %c0_2 = arith.constant 0 : index
    %1 = vector.load %arg1[%c0_1, %c0_2] : memref<32x96xf32, #tpu.memory_space<vmem>>, vector<32x96xf32>
    %cst = arith.constant dense<0.000000e+00> : vector<16x96xf32>
    %2 = tpu.matmul %0, %1, %cst {dimension_numbers = #tpu.dot_dimension_numbers<[1], [0], [0], [1], [0, 0, 1, 1], [], []>} : vector<16x32xf32>, vector<32x96xf32>, vector<16x96xf32> -> vector<16x96xf32>
    %c0_3 = arith.constant 0 : index
    %c0_4 = arith.constant 0 : index
    %3 = vector.load %arg2[%c0_3, %c0_4] : memref<1x96xf32, #tpu.memory_space<vmem>>, vector<1x96xf32>
    %4 = vector.broadcast %3 : vector<1x96xf32> to vector<16x96xf32>
    %5 = arith.addf %2, %4 : vector<16x96xf32>
    %c0_5 = arith.constant 0 : index
    %c0_6 = arith.constant 0 : index
    %6 = vector.load %arg3[%c0_5, %c0_6] : memref<32x32xf32, #tpu.memory_space<vmem>>, vector<32x32xf32>
    %7 = vector.extract_strided_slice %5 {offsets = [0, 0], sizes = [8, 96], strides = [1, 1]} : vector<16x96xf32> to vector<8x96xf32>
    %cst_7 = arith.constant 0.000000e+00 : f32
    %8 = vector.broadcast %cst_7 : f32 to vector<8x32xf32>
    %9 = vector.extract_strided_slice %7 {offsets = [0, 0], sizes = [8, 8], strides = [1, 1]} : vector<8x96xf32> to vector<8x8xf32>
    %10 = vector.extract_strided_slice %7 {offsets = [0, 32], sizes = [8, 8], strides = [1, 1]} : vector<8x96xf32> to vector<8x8xf32>
    %11 = vector.extract_strided_slice %7 {offsets = [0, 64], sizes = [8, 8], strides = [1, 1]} : vector<8x96xf32> to vector<8x8xf32>
    %cst_8 = arith.constant dense<0.000000e+00> : vector<8x8xf32>
    %12 = tpu.matmul %9, %10, %cst_8 {dimension_numbers = #tpu.dot_dimension_numbers<[1], [1], [0], [0], [0, 0, 1, 0], [], []>} : vector<8x8xf32>, vector<8x8xf32>, vector<8x8xf32> -> vector<8x8xf32>
    %cst_9 = arith.constant dense<0xFF800000> : vector<8xf32>
    %13 = vector.multi_reduction <maximumf>, %12, %cst_9 [1] : vector<8x8xf32> to vector<8xf32>
    %14 = vector.shape_cast %13 : vector<8xf32> to vector<8x1xf32>
    %15 = vector.broadcast %14 : vector<8x1xf32> to vector<8x8xf32>
    %16 = arith.subf %12, %15 : vector<8x8xf32>
    %17 = math.exp %16 : vector<8x8xf32>
    %cst_10 = arith.constant dense<0.000000e+00> : vector<8xf32>
    %18 = vector.multi_reduction <add>, %17, %cst_10 [1] : vector<8x8xf32> to vector<8xf32>
    %19 = vector.shape_cast %18 : vector<8xf32> to vector<8x1xf32>
    %20 = vector.broadcast %19 : vector<8x1xf32> to vector<8x8xf32>
    %21 = arith.divf %17, %20 : vector<8x8xf32>
    %cst_11 = arith.constant dense<0.000000e+00> : vector<8x8xf32>
    %22 = tpu.matmul %21, %11, %cst_11 {dimension_numbers = #tpu.dot_dimension_numbers<[1], [0], [0], [1], [0, 0, 1, 1], [], []>} : vector<8x8xf32>, vector<8x8xf32>, vector<8x8xf32> -> vector<8x8xf32>
    %23 = vector.extract_strided_slice %6 {offsets = [0, 0], sizes = [8, 32], strides = [1, 1]} : vector<32x32xf32> to vector<8x32xf32>
    %cst_12 = arith.constant dense<0.000000e+00> : vector<8x32xf32>
    %24 = tpu.matmul %22, %23, %cst_12 {dimension_numbers = #tpu.dot_dimension_numbers<[1], [0], [0], [1], [0, 0, 1, 1], [], []>} : vector<8x8xf32>, vector<8x32xf32>, vector<8x32xf32> -> vector<8x32xf32>
    %25 = arith.addf %8, %24 : vector<8x32xf32>
    %26 = vector.extract_strided_slice %7 {offsets = [0, 8], sizes = [8, 8], strides = [1, 1]} : vector<8x96xf32> to vector<8x8xf32>
    %27 = vector.extract_strided_slice %7 {offsets = [0, 40], sizes = [8, 8], strides = [1, 1]} : vector<8x96xf32> to vector<8x8xf32>
    %28 = vector.extract_strided_slice %7 {offsets = [0, 72], sizes = [8, 8], strides = [1, 1]} : vector<8x96xf32> to vector<8x8xf32>
    %cst_13 = arith.constant dense<0.000000e+00> : vector<8x8xf32>
    %29 = tpu.matmul %26, %27, %cst_13 {dimension_numbers = #tpu.dot_dimension_numbers<[1], [1], [0], [0], [0, 0, 1, 0], [], []>} : vector<8x8xf32>, vector<8x8xf32>, vector<8x8xf32> -> vector<8x8xf32>
    %cst_14 = arith.constant dense<0xFF800000> : vector<8xf32>
    %30 = vector.multi_reduction <maximumf>, %29, %cst_14 [1] : vector<8x8xf32> to vector<8xf32>
    %31 = vector.shape_cast %30 : vector<8xf32> to vector<8x1xf32>
    %32 = vector.broadcast %31 : vector<8x1xf32> to vector<8x8xf32>
    %33 = arith.subf %29, %32 : vector<8x8xf32>
    %34 = math.exp %33 : vector<8x8xf32>
    %cst_15 = arith.constant dense<0.000000e+00> : vector<8xf32>
    %35 = vector.multi_reduction <add>, %34, %cst_15 [1] : vector<8x8xf32> to vector<8xf32>
    %36 = vector.shape_cast %35 : vector<8xf32> to vector<8x1xf32>
    %37 = vector.broadcast %36 : vector<8x1xf32> to vector<8x8xf32>
    %38 = arith.divf %34, %37 : vector<8x8xf32>
    %cst_16 = arith.constant dense<0.000000e+00> : vector<8x8xf32>
    %39 = tpu.matmul %38, %28, %cst_16 {dimension_numbers = #tpu.dot_dimension_numbers<[1], [0], [0], [1], [0, 0, 1, 1], [], []>} : vector<8x8xf32>, vector<8x8xf32>, vector<8x8xf32> -> vector<8x8xf32>
    %40 = vector.extract_strided_slice %6 {offsets = [8, 0], sizes = [8, 32], strides = [1, 1]} : vector<32x32xf32> to vector<8x32xf32>
    %cst_17 = arith.constant dense<0.000000e+00> : vector<8x32xf32>
    %41 = tpu.matmul %39, %40, %cst_17 {dimension_numbers = #tpu.dot_dimension_numbers<[1], [0], [0], [1], [0, 0, 1, 1], [], []>} : vector<8x8xf32>, vector<8x32xf32>, vector<8x32xf32> -> vector<8x32xf32>
    %42 = arith.addf %25, %41 : vector<8x32xf32>
    %43 = vector.extract_strided_slice %7 {offsets = [0, 16], sizes = [8, 8], strides = [1, 1]} : vector<8x96xf32> to vector<8x8xf32>
    %44 = vector.extract_strided_slice %7 {offsets = [0, 48], sizes = [8, 8], strides = [1, 1]} : vector<8x96xf32> to vector<8x8xf32>
    %45 = vector.extract_strided_slice %7 {offsets = [0, 80], sizes = [8, 8], strides = [1, 1]} : vector<8x96xf32> to vector<8x8xf32>
    %cst_18 = arith.constant dense<0.000000e+00> : vector<8x8xf32>
    %46 = tpu.matmul %43, %44, %cst_18 {dimension_numbers = #tpu.dot_dimension_numbers<[1], [1], [0], [0], [0, 0, 1, 0], [], []>} : vector<8x8xf32>, vector<8x8xf32>, vector<8x8xf32> -> vector<8x8xf32>
    %cst_19 = arith.constant dense<0xFF800000> : vector<8xf32>
    %47 = vector.multi_reduction <maximumf>, %46, %cst_19 [1] : vector<8x8xf32> to vector<8xf32>
    %48 = vector.shape_cast %47 : vector<8xf32> to vector<8x1xf32>
    %49 = vector.broadcast %48 : vector<8x1xf32> to vector<8x8xf32>
    %50 = arith.subf %46, %49 : vector<8x8xf32>
    %51 = math.exp %50 : vector<8x8xf32>
    %cst_20 = arith.constant dense<0.000000e+00> : vector<8xf32>
    %52 = vector.multi_reduction <add>, %51, %cst_20 [1] : vector<8x8xf32> to vector<8xf32>
    %53 = vector.shape_cast %52 : vector<8xf32> to vector<8x1xf32>
    %54 = vector.broadcast %53 : vector<8x1xf32> to vector<8x8xf32>
    %55 = arith.divf %51, %54 : vector<8x8xf32>
    %cst_21 = arith.constant dense<0.000000e+00> : vector<8x8xf32>
    %56 = tpu.matmul %55, %45, %cst_21 {dimension_numbers = #tpu.dot_dimension_numbers<[1], [0], [0], [1], [0, 0, 1, 1], [], []>} : vector<8x8xf32>, vector<8x8xf32>, vector<8x8xf32> -> vector<8x8xf32>
    %57 = vector.extract_strided_slice %6 {offsets = [16, 0], sizes = [8, 32], strides = [1, 1]} : vector<32x32xf32> to vector<8x32xf32>
    %cst_22 = arith.constant dense<0.000000e+00> : vector<8x32xf32>
    %58 = tpu.matmul %56, %57, %cst_22 {dimension_numbers = #tpu.dot_dimension_numbers<[1], [0], [0], [1], [0, 0, 1, 1], [], []>} : vector<8x8xf32>, vector<8x32xf32>, vector<8x32xf32> -> vector<8x32xf32>
    %59 = arith.addf %42, %58 : vector<8x32xf32>
    %60 = vector.extract_strided_slice %7 {offsets = [0, 24], sizes = [8, 8], strides = [1, 1]} : vector<8x96xf32> to vector<8x8xf32>
    %61 = vector.extract_strided_slice %7 {offsets = [0, 56], sizes = [8, 8], strides = [1, 1]} : vector<8x96xf32> to vector<8x8xf32>
    %62 = vector.extract_strided_slice %7 {offsets = [0, 88], sizes = [8, 8], strides = [1, 1]} : vector<8x96xf32> to vector<8x8xf32>
    %cst_23 = arith.constant dense<0.000000e+00> : vector<8x8xf32>
    %63 = tpu.matmul %60, %61, %cst_23 {dimension_numbers = #tpu.dot_dimension_numbers<[1], [1], [0], [0], [0, 0, 1, 0], [], []>} : vector<8x8xf32>, vector<8x8xf32>, vector<8x8xf32> -> vector<8x8xf32>
    %cst_24 = arith.constant dense<0xFF800000> : vector<8xf32>
    %64 = vector.multi_reduction <maximumf>, %63, %cst_24 [1] : vector<8x8xf32> to vector<8xf32>
    %65 = vector.shape_cast %64 : vector<8xf32> to vector<8x1xf32>
    %66 = vector.broadcast %65 : vector<8x1xf32> to vector<8x8xf32>
    %67 = arith.subf %63, %66 : vector<8x8xf32>
    %68 = math.exp %67 : vector<8x8xf32>
    %cst_25 = arith.constant dense<0.000000e+00> : vector<8xf32>
    %69 = vector.multi_reduction <add>, %68, %cst_25 [1] : vector<8x8xf32> to vector<8xf32>
    %70 = vector.shape_cast %69 : vector<8xf32> to vector<8x1xf32>
    %71 = vector.broadcast %70 : vector<8x1xf32> to vector<8x8xf32>
    %72 = arith.divf %68, %71 : vector<8x8xf32>
    %cst_26 = arith.constant dense<0.000000e+00> : vector<8x8xf32>
    %73 = tpu.matmul %72, %62, %cst_26 {dimension_numbers = #tpu.dot_dimension_numbers<[1], [0], [0], [1], [0, 0, 1, 1], [], []>} : vector<8x8xf32>, vector<8x8xf32>, vector<8x8xf32> -> vector<8x8xf32>
    %74 = vector.extract_strided_slice %6 {offsets = [24, 0], sizes = [8, 32], strides = [1, 1]} : vector<32x32xf32> to vector<8x32xf32>
    %cst_27 = arith.constant dense<0.000000e+00> : vector<8x32xf32>
    %75 = tpu.matmul %73, %74, %cst_27 {dimension_numbers = #tpu.dot_dimension_numbers<[1], [0], [0], [1], [0, 0, 1, 1], [], []>} : vector<8x8xf32>, vector<8x32xf32>, vector<8x32xf32> -> vector<8x32xf32>
    %76 = arith.addf %59, %75 : vector<8x32xf32>
    %c0_28 = arith.constant 0 : index
    %c0_29 = arith.constant 0 : index
    %77 = vector.load %arg4[%c0_28, %c0_29] : memref<1x32xf32, #tpu.memory_space<vmem>>, vector<1x32xf32>
    %78 = vector.broadcast %77 : vector<1x32xf32> to vector<8x32xf32>
    %79 = arith.addf %76, %78 : vector<8x32xf32>
    %80 = vector.extract_strided_slice %5 {offsets = [8, 0], sizes = [8, 96], strides = [1, 1]} : vector<16x96xf32> to vector<8x96xf32>
    %cst_30 = arith.constant 0.000000e+00 : f32
    %81 = vector.broadcast %cst_30 : f32 to vector<8x32xf32>
    %82 = vector.extract_strided_slice %80 {offsets = [0, 0], sizes = [8, 8], strides = [1, 1]} : vector<8x96xf32> to vector<8x8xf32>
    %83 = vector.extract_strided_slice %80 {offsets = [0, 32], sizes = [8, 8], strides = [1, 1]} : vector<8x96xf32> to vector<8x8xf32>
    %84 = vector.extract_strided_slice %80 {offsets = [0, 64], sizes = [8, 8], strides = [1, 1]} : vector<8x96xf32> to vector<8x8xf32>
    %cst_31 = arith.constant dense<0.000000e+00> : vector<8x8xf32>
    %85 = tpu.matmul %82, %83, %cst_31 {dimension_numbers = #tpu.dot_dimension_numbers<[1], [1], [0], [0], [0, 0, 1, 0], [], []>} : vector<8x8xf32>, vector<8x8xf32>, vector<8x8xf32> -> vector<8x8xf32>
    %cst_32 = arith.constant dense<0xFF800000> : vector<8xf32>
    %86 = vector.multi_reduction <maximumf>, %85, %cst_32 [1] : vector<8x8xf32> to vector<8xf32>
    %87 = vector.shape_cast %86 : vector<8xf32> to vector<8x1xf32>
    %88 = vector.broadcast %87 : vector<8x1xf32> to vector<8x8xf32>
    %89 = arith.subf %85, %88 : vector<8x8xf32>
    %90 = math.exp %89 : vector<8x8xf32>
    %cst_33 = arith.constant dense<0.000000e+00> : vector<8xf32>
    %91 = vector.multi_reduction <add>, %90, %cst_33 [1] : vector<8x8xf32> to vector<8xf32>
    %92 = vector.shape_cast %91 : vector<8xf32> to vector<8x1xf32>
    %93 = vector.broadcast %92 : vector<8x1xf32> to vector<8x8xf32>
    %94 = arith.divf %90, %93 : vector<8x8xf32>
    %cst_34 = arith.constant dense<0.000000e+00> : vector<8x8xf32>
    %95 = tpu.matmul %94, %84, %cst_34 {dimension_numbers = #tpu.dot_dimension_numbers<[1], [0], [0], [1], [0, 0, 1, 1], [], []>} : vector<8x8xf32>, vector<8x8xf32>, vector<8x8xf32> -> vector<8x8xf32>
    %96 = vector.extract_strided_slice %6 {offsets = [0, 0], sizes = [8, 32], strides = [1, 1]} : vector<32x32xf32> to vector<8x32xf32>
    %cst_35 = arith.constant dense<0.000000e+00> : vector<8x32xf32>
    %97 = tpu.matmul %95, %96, %cst_35 {dimension_numbers = #tpu.dot_dimension_numbers<[1], [0], [0], [1], [0, 0, 1, 1], [], []>} : vector<8x8xf32>, vector<8x32xf32>, vector<8x32xf32> -> vector<8x32xf32>
    %98 = arith.addf %81, %97 : vector<8x32xf32>
    %99 = vector.extract_strided_slice %80 {offsets = [0, 8], sizes = [8, 8], strides = [1, 1]} : vector<8x96xf32> to vector<8x8xf32>
    %100 = vector.extract_strided_slice %80 {offsets = [0, 40], sizes = [8, 8], strides = [1, 1]} : vector<8x96xf32> to vector<8x8xf32>
    %101 = vector.extract_strided_slice %80 {offsets = [0, 72], sizes = [8, 8], strides = [1, 1]} : vector<8x96xf32> to vector<8x8xf32>
    %cst_36 = arith.constant dense<0.000000e+00> : vector<8x8xf32>
    %102 = tpu.matmul %99, %100, %cst_36 {dimension_numbers = #tpu.dot_dimension_numbers<[1], [1], [0], [0], [0, 0, 1, 0], [], []>} : vector<8x8xf32>, vector<8x8xf32>, vector<8x8xf32> -> vector<8x8xf32>
    %cst_37 = arith.constant dense<0xFF800000> : vector<8xf32>
    %103 = vector.multi_reduction <maximumf>, %102, %cst_37 [1] : vector<8x8xf32> to vector<8xf32>
    %104 = vector.shape_cast %103 : vector<8xf32> to vector<8x1xf32>
    %105 = vector.broadcast %104 : vector<8x1xf32> to vector<8x8xf32>
    %106 = arith.subf %102, %105 : vector<8x8xf32>
    %107 = math.exp %106 : vector<8x8xf32>
    %cst_38 = arith.constant dense<0.000000e+00> : vector<8xf32>
    %108 = vector.multi_reduction <add>, %107, %cst_38 [1] : vector<8x8xf32> to vector<8xf32>
    %109 = vector.shape_cast %108 : vector<8xf32> to vector<8x1xf32>
    %110 = vector.broadcast %109 : vector<8x1xf32> to vector<8x8xf32>
    %111 = arith.divf %107, %110 : vector<8x8xf32>
    %cst_39 = arith.constant dense<0.000000e+00> : vector<8x8xf32>
    %112 = tpu.matmul %111, %101, %cst_39 {dimension_numbers = #tpu.dot_dimension_numbers<[1], [0], [0], [1], [0, 0, 1, 1], [], []>} : vector<8x8xf32>, vector<8x8xf32>, vector<8x8xf32> -> vector<8x8xf32>
    %113 = vector.extract_strided_slice %6 {offsets = [8, 0], sizes = [8, 32], strides = [1, 1]} : vector<32x32xf32> to vector<8x32xf32>
    %cst_40 = arith.constant dense<0.000000e+00> : vector<8x32xf32>
    %114 = tpu.matmul %112, %113, %cst_40 {dimension_numbers = #tpu.dot_dimension_numbers<[1], [0], [0], [1], [0, 0, 1, 1], [], []>} : vector<8x8xf32>, vector<8x32xf32>, vector<8x32xf32> -> vector<8x32xf32>
    %115 = arith.addf %98, %114 : vector<8x32xf32>
    %116 = vector.extract_strided_slice %80 {offsets = [0, 16], sizes = [8, 8], strides = [1, 1]} : vector<8x96xf32> to vector<8x8xf32>
    %117 = vector.extract_strided_slice %80 {offsets = [0, 48], sizes = [8, 8], strides = [1, 1]} : vector<8x96xf32> to vector<8x8xf32>
    %118 = vector.extract_strided_slice %80 {offsets = [0, 80], sizes = [8, 8], strides = [1, 1]} : vector<8x96xf32> to vector<8x8xf32>
    %cst_41 = arith.constant dense<0.000000e+00> : vector<8x8xf32>
    %119 = tpu.matmul %116, %117, %cst_41 {dimension_numbers = #tpu.dot_dimension_numbers<[1], [1], [0], [0], [0, 0, 1, 0], [], []>} : vector<8x8xf32>, vector<8x8xf32>, vector<8x8xf32> -> vector<8x8xf32>
    %cst_42 = arith.constant dense<0xFF800000> : vector<8xf32>
    %120 = vector.multi_reduction <maximumf>, %119, %cst_42 [1] : vector<8x8xf32> to vector<8xf32>
    %121 = vector.shape_cast %120 : vector<8xf32> to vector<8x1xf32>
    %122 = vector.broadcast %121 : vector<8x1xf32> to vector<8x8xf32>
    %123 = arith.subf %119, %122 : vector<8x8xf32>
    %124 = math.exp %123 : vector<8x8xf32>
    %cst_43 = arith.constant dense<0.000000e+00> : vector<8xf32>
    %125 = vector.multi_reduction <add>, %124, %cst_43 [1] : vector<8x8xf32> to vector<8xf32>
    %126 = vector.shape_cast %125 : vector<8xf32> to vector<8x1xf32>
    %127 = vector.broadcast %126 : vector<8x1xf32> to vector<8x8xf32>
    %128 = arith.divf %124, %127 : vector<8x8xf32>
    %cst_44 = arith.constant dense<0.000000e+00> : vector<8x8xf32>
    %129 = tpu.matmul %128, %118, %cst_44 {dimension_numbers = #tpu.dot_dimension_numbers<[1], [0], [0], [1], [0, 0, 1, 1], [], []>} : vector<8x8xf32>, vector<8x8xf32>, vector<8x8xf32> -> vector<8x8xf32>
    %130 = vector.extract_strided_slice %6 {offsets = [16, 0], sizes = [8, 32], strides = [1, 1]} : vector<32x32xf32> to vector<8x32xf32>
    %cst_45 = arith.constant dense<0.000000e+00> : vector<8x32xf32>
    %131 = tpu.matmul %129, %130, %cst_45 {dimension_numbers = #tpu.dot_dimension_numbers<[1], [0], [0], [1], [0, 0, 1, 1], [], []>} : vector<8x8xf32>, vector<8x32xf32>, vector<8x32xf32> -> vector<8x32xf32>
    %132 = arith.addf %115, %131 : vector<8x32xf32>
    %133 = vector.extract_strided_slice %80 {offsets = [0, 24], sizes = [8, 8], strides = [1, 1]} : vector<8x96xf32> to vector<8x8xf32>
    %134 = vector.extract_strided_slice %80 {offsets = [0, 56], sizes = [8, 8], strides = [1, 1]} : vector<8x96xf32> to vector<8x8xf32>
    %135 = vector.extract_strided_slice %80 {offsets = [0, 88], sizes = [8, 8], strides = [1, 1]} : vector<8x96xf32> to vector<8x8xf32>
    %cst_46 = arith.constant dense<0.000000e+00> : vector<8x8xf32>
    %136 = tpu.matmul %133, %134, %cst_46 {dimension_numbers = #tpu.dot_dimension_numbers<[1], [1], [0], [0], [0, 0, 1, 0], [], []>} : vector<8x8xf32>, vector<8x8xf32>, vector<8x8xf32> -> vector<8x8xf32>
    %cst_47 = arith.constant dense<0xFF800000> : vector<8xf32>
    %137 = vector.multi_reduction <maximumf>, %136, %cst_47 [1] : vector<8x8xf32> to vector<8xf32>
    %138 = vector.shape_cast %137 : vector<8xf32> to vector<8x1xf32>
    %139 = vector.broadcast %138 : vector<8x1xf32> to vector<8x8xf32>
    %140 = arith.subf %136, %139 : vector<8x8xf32>
    %141 = math.exp %140 : vector<8x8xf32>
    %cst_48 = arith.constant dense<0.000000e+00> : vector<8xf32>
    %142 = vector.multi_reduction <add>, %141, %cst_48 [1] : vector<8x8xf32> to vector<8xf32>
    %143 = vector.shape_cast %142 : vector<8xf32> to vector<8x1xf32>
    %144 = vector.broadcast %143 : vector<8x1xf32> to vector<8x8xf32>
    %145 = arith.divf %141, %144 : vector<8x8xf32>
    %cst_49 = arith.constant dense<0.000000e+00> : vector<8x8xf32>
    %146 = tpu.matmul %145, %135, %cst_49 {dimension_numbers = #tpu.dot_dimension_numbers<[1], [0], [0], [1], [0, 0, 1, 1], [], []>} : vector<8x8xf32>, vector<8x8xf32>, vector<8x8xf32> -> vector<8x8xf32>
    %147 = vector.extract_strided_slice %6 {offsets = [24, 0], sizes = [8, 32], strides = [1, 1]} : vector<32x32xf32> to vector<8x32xf32>
    %cst_50 = arith.constant dense<0.000000e+00> : vector<8x32xf32>
    %148 = tpu.matmul %146, %147, %cst_50 {dimension_numbers = #tpu.dot_dimension_numbers<[1], [0], [0], [1], [0, 0, 1, 1], [], []>} : vector<8x8xf32>, vector<8x32xf32>, vector<8x32xf32> -> vector<8x32xf32>
    %149 = arith.addf %132, %148 : vector<8x32xf32>
    %c0_51 = arith.constant 0 : index
    %c0_52 = arith.constant 0 : index
    %150 = vector.load %arg4[%c0_51, %c0_52] : memref<1x32xf32, #tpu.memory_space<vmem>>, vector<1x32xf32>
    %151 = vector.broadcast %150 : vector<1x32xf32> to vector<8x32xf32>
    %152 = arith.addf %149, %151 : vector<8x32xf32>
    %153 = tpu.concatenate %79, %152 in 0 : vector<8x32xf32>, vector<8x32xf32> -> vector<16x32xf32>
    %c0_53 = arith.constant 0 : index
    %c0_54 = arith.constant 0 : index
    %154 = vector.load %arg5[%c0_53, %c0_54] : memref<32x64xf32, #tpu.memory_space<vmem>>, vector<32x64xf32>
    %cst_55 = arith.constant dense<0.000000e+00> : vector<16x64xf32>
    %155 = tpu.matmul %153, %154, %cst_55 {dimension_numbers = #tpu.dot_dimension_numbers<[1], [0], [0], [1], [0, 0, 1, 1], [], []>} : vector<16x32xf32>, vector<32x64xf32>, vector<16x64xf32> -> vector<16x64xf32>
    %c0_56 = arith.constant 0 : index
    %c0_57 = arith.constant 0 : index
    %156 = vector.load %arg6[%c0_56, %c0_57] : memref<1x64xf32, #tpu.memory_space<vmem>>, vector<1x64xf32>
    %157 = vector.broadcast %156 : vector<1x64xf32> to vector<16x64xf32>
    %158 = arith.addf %155, %157 : vector<16x64xf32>
    %cst_58 = arith.constant 0.000000e+00 : f32
    %159 = vector.broadcast %cst_58 : f32 to vector<16x64xf32>
    %160 = arith.maximumf %158, %159 : vector<16x64xf32>
    %c0_59 = arith.constant 0 : index
    %c0_60 = arith.constant 0 : index
    %161 = vector.load %arg7[%c0_59, %c0_60] : memref<64x32xf32, #tpu.memory_space<vmem>>, vector<64x32xf32>
    %cst_61 = arith.constant dense<0.000000e+00> : vector<16x32xf32>
    %162 = tpu.matmul %160, %161, %cst_61 {dimension_numbers = #tpu.dot_dimension_numbers<[1], [0], [0], [1], [0, 0, 1, 1], [], []>} : vector<16x64xf32>, vector<64x32xf32>, vector<16x32xf32> -> vector<16x32xf32>
    %c0_62 = arith.constant 0 : index
    %c0_63 = arith.constant 0 : index
    %163 = vector.load %arg8[%c0_62, %c0_63] : memref<1x32xf32, #tpu.memory_space<vmem>>, vector<1x32xf32>
    %164 = vector.broadcast %163 : vector<1x32xf32> to vector<16x32xf32>
    %165 = arith.addf %162, %164 : vector<16x32xf32>
    %c0_64 = arith.constant 0 : index
    %c0_65 = arith.constant 0 : index
    %166 = vector.load %arg9[%c0_64, %c0_65] : memref<32x96xf32, #tpu.memory_space<vmem>>, vector<32x96xf32>
    %cst_66 = arith.constant dense<0.000000e+00> : vector<16x96xf32>
    %167 = tpu.matmul %165, %166, %cst_66 {dimension_numbers = #tpu.dot_dimension_numbers<[1], [0], [0], [1], [0, 0, 1, 1], [], []>} : vector<16x32xf32>, vector<32x96xf32>, vector<16x96xf32> -> vector<16x96xf32>
    %c0_67 = arith.constant 0 : index
    %c0_68 = arith.constant 0 : index
    %168 = vector.load %arg10[%c0_67, %c0_68] : memref<1x96xf32, #tpu.memory_space<vmem>>, vector<1x96xf32>
    %169 = vector.broadcast %168 : vector<1x96xf32> to vector<16x96xf32>
    %170 = arith.addf %167, %169 : vector<16x96xf32>
    %c0_69 = arith.constant 0 : index
    %c0_70 = arith.constant 0 : index
    %171 = vector.load %arg11[%c0_69, %c0_70] : memref<32x32xf32, #tpu.memory_space<vmem>>, vector<32x32xf32>
    %172 = vector.extract_strided_slice %170 {offsets = [0, 0], sizes = [8, 96], strides = [1, 1]} : vector<16x96xf32> to vector<8x96xf32>
    %cst_71 = arith.constant 0.000000e+00 : f32
    %173 = vector.broadcast %cst_71 : f32 to vector<8x32xf32>
    %174 = vector.extract_strided_slice %172 {offsets = [0, 0], sizes = [8, 8], strides = [1, 1]} : vector<8x96xf32> to vector<8x8xf32>
    %175 = vector.extract_strided_slice %172 {offsets = [0, 32], sizes = [8, 8], strides = [1, 1]} : vector<8x96xf32> to vector<8x8xf32>
    %176 = vector.extract_strided_slice %172 {offsets = [0, 64], sizes = [8, 8], strides = [1, 1]} : vector<8x96xf32> to vector<8x8xf32>
    %cst_72 = arith.constant dense<0.000000e+00> : vector<8x8xf32>
    %177 = tpu.matmul %174, %175, %cst_72 {dimension_numbers = #tpu.dot_dimension_numbers<[1], [1], [0], [0], [0, 0, 1, 0], [], []>} : vector<8x8xf32>, vector<8x8xf32>, vector<8x8xf32> -> vector<8x8xf32>
    %cst_73 = arith.constant dense<0xFF800000> : vector<8xf32>
    %178 = vector.multi_reduction <maximumf>, %177, %cst_73 [1] : vector<8x8xf32> to vector<8xf32>
    %179 = vector.shape_cast %178 : vector<8xf32> to vector<8x1xf32>
    %180 = vector.broadcast %179 : vector<8x1xf32> to vector<8x8xf32>
    %181 = arith.subf %177, %180 : vector<8x8xf32>
    %182 = math.exp %181 : vector<8x8xf32>
    %cst_74 = arith.constant dense<0.000000e+00> : vector<8xf32>
    %183 = vector.multi_reduction <add>, %182, %cst_74 [1] : vector<8x8xf32> to vector<8xf32>
    %184 = vector.shape_cast %183 : vector<8xf32> to vector<8x1xf32>
    %185 = vector.broadcast %184 : vector<8x1xf32> to vector<8x8xf32>
    %186 = arith.divf %182, %185 : vector<8x8xf32>
    %cst_75 = arith.constant dense<0.000000e+00> : vector<8x8xf32>
    %187 = tpu.matmul %186, %176, %cst_75 {dimension_numbers = #tpu.dot_dimension_numbers<[1], [0], [0], [1], [0, 0, 1, 1], [], []>} : vector<8x8xf32>, vector<8x8xf32>, vector<8x8xf32> -> vector<8x8xf32>
    %188 = vector.extract_strided_slice %171 {offsets = [0, 0], sizes = [8, 32], strides = [1, 1]} : vector<32x32xf32> to vector<8x32xf32>
    %cst_76 = arith.constant dense<0.000000e+00> : vector<8x32xf32>
    %189 = tpu.matmul %187, %188, %cst_76 {dimension_numbers = #tpu.dot_dimension_numbers<[1], [0], [0], [1], [0, 0, 1, 1], [], []>} : vector<8x8xf32>, vector<8x32xf32>, vector<8x32xf32> -> vector<8x32xf32>
    %190 = arith.addf %173, %189 : vector<8x32xf32>
    %191 = vector.extract_strided_slice %172 {offsets = [0, 8], sizes = [8, 8], strides = [1, 1]} : vector<8x96xf32> to vector<8x8xf32>
    %192 = vector.extract_strided_slice %172 {offsets = [0, 40], sizes = [8, 8], strides = [1, 1]} : vector<8x96xf32> to vector<8x8xf32>
    %193 = vector.extract_strided_slice %172 {offsets = [0, 72], sizes = [8, 8], strides = [1, 1]} : vector<8x96xf32> to vector<8x8xf32>
    %cst_77 = arith.constant dense<0.000000e+00> : vector<8x8xf32>
    %194 = tpu.matmul %191, %192, %cst_77 {dimension_numbers = #tpu.dot_dimension_numbers<[1], [1], [0], [0], [0, 0, 1, 0], [], []>} : vector<8x8xf32>, vector<8x8xf32>, vector<8x8xf32> -> vector<8x8xf32>
    %cst_78 = arith.constant dense<0xFF800000> : vector<8xf32>
    %195 = vector.multi_reduction <maximumf>, %194, %cst_78 [1] : vector<8x8xf32> to vector<8xf32>
    %196 = vector.shape_cast %195 : vector<8xf32> to vector<8x1xf32>
    %197 = vector.broadcast %196 : vector<8x1xf32> to vector<8x8xf32>
    %198 = arith.subf %194, %197 : vector<8x8xf32>
    %199 = math.exp %198 : vector<8x8xf32>
    %cst_79 = arith.constant dense<0.000000e+00> : vector<8xf32>
    %200 = vector.multi_reduction <add>, %199, %cst_79 [1] : vector<8x8xf32> to vector<8xf32>
    %201 = vector.shape_cast %200 : vector<8xf32> to vector<8x1xf32>
    %202 = vector.broadcast %201 : vector<8x1xf32> to vector<8x8xf32>
    %203 = arith.divf %199, %202 : vector<8x8xf32>
    %cst_80 = arith.constant dense<0.000000e+00> : vector<8x8xf32>
    %204 = tpu.matmul %203, %193, %cst_80 {dimension_numbers = #tpu.dot_dimension_numbers<[1], [0], [0], [1], [0, 0, 1, 1], [], []>} : vector<8x8xf32>, vector<8x8xf32>, vector<8x8xf32> -> vector<8x8xf32>
    %205 = vector.extract_strided_slice %171 {offsets = [8, 0], sizes = [8, 32], strides = [1, 1]} : vector<32x32xf32> to vector<8x32xf32>
    %cst_81 = arith.constant dense<0.000000e+00> : vector<8x32xf32>
    %206 = tpu.matmul %204, %205, %cst_81 {dimension_numbers = #tpu.dot_dimension_numbers<[1], [0], [0], [1], [0, 0, 1, 1], [], []>} : vector<8x8xf32>, vector<8x32xf32>, vector<8x32xf32> -> vector<8x32xf32>
    %207 = arith.addf %190, %206 : vector<8x32xf32>
    %208 = vector.extract_strided_slice %172 {offsets = [0, 16], sizes = [8, 8], strides = [1, 1]} : vector<8x96xf32> to vector<8x8xf32>
    %209 = vector.extract_strided_slice %172 {offsets = [0, 48], sizes = [8, 8], strides = [1, 1]} : vector<8x96xf32> to vector<8x8xf32>
    %210 = vector.extract_strided_slice %172 {offsets = [0, 80], sizes = [8, 8], strides = [1, 1]} : vector<8x96xf32> to vector<8x8xf32>
    %cst_82 = arith.constant dense<0.000000e+00> : vector<8x8xf32>
    %211 = tpu.matmul %208, %209, %cst_82 {dimension_numbers = #tpu.dot_dimension_numbers<[1], [1], [0], [0], [0, 0, 1, 0], [], []>} : vector<8x8xf32>, vector<8x8xf32>, vector<8x8xf32> -> vector<8x8xf32>
    %cst_83 = arith.constant dense<0xFF800000> : vector<8xf32>
    %212 = vector.multi_reduction <maximumf>, %211, %cst_83 [1] : vector<8x8xf32> to vector<8xf32>
    %213 = vector.shape_cast %212 : vector<8xf32> to vector<8x1xf32>
    %214 = vector.broadcast %213 : vector<8x1xf32> to vector<8x8xf32>
    %215 = arith.subf %211, %214 : vector<8x8xf32>
    %216 = math.exp %215 : vector<8x8xf32>
    %cst_84 = arith.constant dense<0.000000e+00> : vector<8xf32>
    %217 = vector.multi_reduction <add>, %216, %cst_84 [1] : vector<8x8xf32> to vector<8xf32>
    %218 = vector.shape_cast %217 : vector<8xf32> to vector<8x1xf32>
    %219 = vector.broadcast %218 : vector<8x1xf32> to vector<8x8xf32>
    %220 = arith.divf %216, %219 : vector<8x8xf32>
    %cst_85 = arith.constant dense<0.000000e+00> : vector<8x8xf32>
    %221 = tpu.matmul %220, %210, %cst_85 {dimension_numbers = #tpu.dot_dimension_numbers<[1], [0], [0], [1], [0, 0, 1, 1], [], []>} : vector<8x8xf32>, vector<8x8xf32>, vector<8x8xf32> -> vector<8x8xf32>
    %222 = vector.extract_strided_slice %171 {offsets = [16, 0], sizes = [8, 32], strides = [1, 1]} : vector<32x32xf32> to vector<8x32xf32>
    %cst_86 = arith.constant dense<0.000000e+00> : vector<8x32xf32>
    %223 = tpu.matmul %221, %222, %cst_86 {dimension_numbers = #tpu.dot_dimension_numbers<[1], [0], [0], [1], [0, 0, 1, 1], [], []>} : vector<8x8xf32>, vector<8x32xf32>, vector<8x32xf32> -> vector<8x32xf32>
    %224 = arith.addf %207, %223 : vector<8x32xf32>
    %225 = vector.extract_strided_slice %172 {offsets = [0, 24], sizes = [8, 8], strides = [1, 1]} : vector<8x96xf32> to vector<8x8xf32>
    %226 = vector.extract_strided_slice %172 {offsets = [0, 56], sizes = [8, 8], strides = [1, 1]} : vector<8x96xf32> to vector<8x8xf32>
    %227 = vector.extract_strided_slice %172 {offsets = [0, 88], sizes = [8, 8], strides = [1, 1]} : vector<8x96xf32> to vector<8x8xf32>
    %cst_87 = arith.constant dense<0.000000e+00> : vector<8x8xf32>
    %228 = tpu.matmul %225, %226, %cst_87 {dimension_numbers = #tpu.dot_dimension_numbers<[1], [1], [0], [0], [0, 0, 1, 0], [], []>} : vector<8x8xf32>, vector<8x8xf32>, vector<8x8xf32> -> vector<8x8xf32>
    %cst_88 = arith.constant dense<0xFF800000> : vector<8xf32>
    %229 = vector.multi_reduction <maximumf>, %228, %cst_88 [1] : vector<8x8xf32> to vector<8xf32>
    %230 = vector.shape_cast %229 : vector<8xf32> to vector<8x1xf32>
    %231 = vector.broadcast %230 : vector<8x1xf32> to vector<8x8xf32>
    %232 = arith.subf %228, %231 : vector<8x8xf32>
    %233 = math.exp %232 : vector<8x8xf32>
    %cst_89 = arith.constant dense<0.000000e+00> : vector<8xf32>
    %234 = vector.multi_reduction <add>, %233, %cst_89 [1] : vector<8x8xf32> to vector<8xf32>
    %235 = vector.shape_cast %234 : vector<8xf32> to vector<8x1xf32>
    %236 = vector.broadcast %235 : vector<8x1xf32> to vector<8x8xf32>
    %237 = arith.divf %233, %236 : vector<8x8xf32>
    %cst_90 = arith.constant dense<0.000000e+00> : vector<8x8xf32>
    %238 = tpu.matmul %237, %227, %cst_90 {dimension_numbers = #tpu.dot_dimension_numbers<[1], [0], [0], [1], [0, 0, 1, 1], [], []>} : vector<8x8xf32>, vector<8x8xf32>, vector<8x8xf32> -> vector<8x8xf32>
    %239 = vector.extract_strided_slice %171 {offsets = [24, 0], sizes = [8, 32], strides = [1, 1]} : vector<32x32xf32> to vector<8x32xf32>
    %cst_91 = arith.constant dense<0.000000e+00> : vector<8x32xf32>
    %240 = tpu.matmul %238, %239, %cst_91 {dimension_numbers = #tpu.dot_dimension_numbers<[1], [0], [0], [1], [0, 0, 1, 1], [], []>} : vector<8x8xf32>, vector<8x32xf32>, vector<8x32xf32> -> vector<8x32xf32>
    %241 = arith.addf %224, %240 : vector<8x32xf32>
    %c0_92 = arith.constant 0 : index
    %c0_93 = arith.constant 0 : index
    %242 = vector.load %arg12[%c0_92, %c0_93] : memref<1x32xf32, #tpu.memory_space<vmem>>, vector<1x32xf32>
    %243 = vector.broadcast %242 : vector<1x32xf32> to vector<8x32xf32>
    %244 = arith.addf %241, %243 : vector<8x32xf32>
    %245 = vector.extract_strided_slice %170 {offsets = [8, 0], sizes = [8, 96], strides = [1, 1]} : vector<16x96xf32> to vector<8x96xf32>
    %cst_94 = arith.constant 0.000000e+00 : f32
    %246 = vector.broadcast %cst_94 : f32 to vector<8x32xf32>
    %247 = vector.extract_strided_slice %245 {offsets = [0, 0], sizes = [8, 8], strides = [1, 1]} : vector<8x96xf32> to vector<8x8xf32>
    %248 = vector.extract_strided_slice %245 {offsets = [0, 32], sizes = [8, 8], strides = [1, 1]} : vector<8x96xf32> to vector<8x8xf32>
    %249 = vector.extract_strided_slice %245 {offsets = [0, 64], sizes = [8, 8], strides = [1, 1]} : vector<8x96xf32> to vector<8x8xf32>
    %cst_95 = arith.constant dense<0.000000e+00> : vector<8x8xf32>
    %250 = tpu.matmul %247, %248, %cst_95 {dimension_numbers = #tpu.dot_dimension_numbers<[1], [1], [0], [0], [0, 0, 1, 0], [], []>} : vector<8x8xf32>, vector<8x8xf32>, vector<8x8xf32> -> vector<8x8xf32>
    %cst_96 = arith.constant dense<0xFF800000> : vector<8xf32>
    %251 = vector.multi_reduction <maximumf>, %250, %cst_96 [1] : vector<8x8xf32> to vector<8xf32>
    %252 = vector.shape_cast %251 : vector<8xf32> to vector<8x1xf32>
    %253 = vector.broadcast %252 : vector<8x1xf32> to vector<8x8xf32>
    %254 = arith.subf %250, %253 : vector<8x8xf32>
    %255 = math.exp %254 : vector<8x8xf32>
    %cst_97 = arith.constant dense<0.000000e+00> : vector<8xf32>
    %256 = vector.multi_reduction <add>, %255, %cst_97 [1] : vector<8x8xf32> to vector<8xf32>
    %257 = vector.shape_cast %256 : vector<8xf32> to vector<8x1xf32>
    %258 = vector.broadcast %257 : vector<8x1xf32> to vector<8x8xf32>
    %259 = arith.divf %255, %258 : vector<8x8xf32>
    %cst_98 = arith.constant dense<0.000000e+00> : vector<8x8xf32>
    %260 = tpu.matmul %259, %249, %cst_98 {dimension_numbers = #tpu.dot_dimension_numbers<[1], [0], [0], [1], [0, 0, 1, 1], [], []>} : vector<8x8xf32>, vector<8x8xf32>, vector<8x8xf32> -> vector<8x8xf32>
    %261 = vector.extract_strided_slice %171 {offsets = [0, 0], sizes = [8, 32], strides = [1, 1]} : vector<32x32xf32> to vector<8x32xf32>
    %cst_99 = arith.constant dense<0.000000e+00> : vector<8x32xf32>
    %262 = tpu.matmul %260, %261, %cst_99 {dimension_numbers = #tpu.dot_dimension_numbers<[1], [0], [0], [1], [0, 0, 1, 1], [], []>} : vector<8x8xf32>, vector<8x32xf32>, vector<8x32xf32> -> vector<8x32xf32>
    %263 = arith.addf %246, %262 : vector<8x32xf32>
    %264 = vector.extract_strided_slice %245 {offsets = [0, 8], sizes = [8, 8], strides = [1, 1]} : vector<8x96xf32> to vector<8x8xf32>
    %265 = vector.extract_strided_slice %245 {offsets = [0, 40], sizes = [8, 8], strides = [1, 1]} : vector<8x96xf32> to vector<8x8xf32>
    %266 = vector.extract_strided_slice %245 {offsets = [0, 72], sizes = [8, 8], strides = [1, 1]} : vector<8x96xf32> to vector<8x8xf32>
    %cst_100 = arith.constant dense<0.000000e+00> : vector<8x8xf32>
    %267 = tpu.matmul %264, %265, %cst_100 {dimension_numbers = #tpu.dot_dimension_numbers<[1], [1], [0], [0], [0, 0, 1, 0], [], []>} : vector<8x8xf32>, vector<8x8xf32>, vector<8x8xf32> -> vector<8x8xf32>
    %cst_101 = arith.constant dense<0xFF800000> : vector<8xf32>
    %268 = vector.multi_reduction <maximumf>, %267, %cst_101 [1] : vector<8x8xf32> to vector<8xf32>
    %269 = vector.shape_cast %268 : vector<8xf32> to vector<8x1xf32>
    %270 = vector.broadcast %269 : vector<8x1xf32> to vector<8x8xf32>
    %271 = arith.subf %267, %270 : vector<8x8xf32>
    %272 = math.exp %271 : vector<8x8xf32>
    %cst_102 = arith.constant dense<0.000000e+00> : vector<8xf32>
    %273 = vector.multi_reduction <add>, %272, %cst_102 [1] : vector<8x8xf32> to vector<8xf32>
    %274 = vector.shape_cast %273 : vector<8xf32> to vector<8x1xf32>
    %275 = vector.broadcast %274 : vector<8x1xf32> to vector<8x8xf32>
    %276 = arith.divf %272, %275 : vector<8x8xf32>
    %cst_103 = arith.constant dense<0.000000e+00> : vector<8x8xf32>
    %277 = tpu.matmul %276, %266, %cst_103 {dimension_numbers = #tpu.dot_dimension_numbers<[1], [0], [0], [1], [0, 0, 1, 1], [], []>} : vector<8x8xf32>, vector<8x8xf32>, vector<8x8xf32> -> vector<8x8xf32>
    %278 = vector.extract_strided_slice %171 {offsets = [8, 0], sizes = [8, 32], strides = [1, 1]} : vector<32x32xf32> to vector<8x32xf32>
    %cst_104 = arith.constant dense<0.000000e+00> : vector<8x32xf32>
    %279 = tpu.matmul %277, %278, %cst_104 {dimension_numbers = #tpu.dot_dimension_numbers<[1], [0], [0], [1], [0, 0, 1, 1], [], []>} : vector<8x8xf32>, vector<8x32xf32>, vector<8x32xf32> -> vector<8x32xf32>
    %280 = arith.addf %263, %279 : vector<8x32xf32>
    %281 = vector.extract_strided_slice %245 {offsets = [0, 16], sizes = [8, 8], strides = [1, 1]} : vector<8x96xf32> to vector<8x8xf32>
    %282 = vector.extract_strided_slice %245 {offsets = [0, 48], sizes = [8, 8], strides = [1, 1]} : vector<8x96xf32> to vector<8x8xf32>
    %283 = vector.extract_strided_slice %245 {offsets = [0, 80], sizes = [8, 8], strides = [1, 1]} : vector<8x96xf32> to vector<8x8xf32>
    %cst_105 = arith.constant dense<0.000000e+00> : vector<8x8xf32>
    %284 = tpu.matmul %281, %282, %cst_105 {dimension_numbers = #tpu.dot_dimension_numbers<[1], [1], [0], [0], [0, 0, 1, 0], [], []>} : vector<8x8xf32>, vector<8x8xf32>, vector<8x8xf32> -> vector<8x8xf32>
    %cst_106 = arith.constant dense<0xFF800000> : vector<8xf32>
    %285 = vector.multi_reduction <maximumf>, %284, %cst_106 [1] : vector<8x8xf32> to vector<8xf32>
    %286 = vector.shape_cast %285 : vector<8xf32> to vector<8x1xf32>
    %287 = vector.broadcast %286 : vector<8x1xf32> to vector<8x8xf32>
    %288 = arith.subf %284, %287 : vector<8x8xf32>
    %289 = math.exp %288 : vector<8x8xf32>
    %cst_107 = arith.constant dense<0.000000e+00> : vector<8xf32>
    %290 = vector.multi_reduction <add>, %289, %cst_107 [1] : vector<8x8xf32> to vector<8xf32>
    %291 = vector.shape_cast %290 : vector<8xf32> to vector<8x1xf32>
    %292 = vector.broadcast %291 : vector<8x1xf32> to vector<8x8xf32>
    %293 = arith.divf %289, %292 : vector<8x8xf32>
    %cst_108 = arith.constant dense<0.000000e+00> : vector<8x8xf32>
    %294 = tpu.matmul %293, %283, %cst_108 {dimension_numbers = #tpu.dot_dimension_numbers<[1], [0], [0], [1], [0, 0, 1, 1], [], []>} : vector<8x8xf32>, vector<8x8xf32>, vector<8x8xf32> -> vector<8x8xf32>
    %295 = vector.extract_strided_slice %171 {offsets = [16, 0], sizes = [8, 32], strides = [1, 1]} : vector<32x32xf32> to vector<8x32xf32>
    %cst_109 = arith.constant dense<0.000000e+00> : vector<8x32xf32>
    %296 = tpu.matmul %294, %295, %cst_109 {dimension_numbers = #tpu.dot_dimension_numbers<[1], [0], [0], [1], [0, 0, 1, 1], [], []>} : vector<8x8xf32>, vector<8x32xf32>, vector<8x32xf32> -> vector<8x32xf32>
    %297 = arith.addf %280, %296 : vector<8x32xf32>
    %298 = vector.extract_strided_slice %245 {offsets = [0, 24], sizes = [8, 8], strides = [1, 1]} : vector<8x96xf32> to vector<8x8xf32>
    %299 = vector.extract_strided_slice %245 {offsets = [0, 56], sizes = [8, 8], strides = [1, 1]} : vector<8x96xf32> to vector<8x8xf32>
    %300 = vector.extract_strided_slice %245 {offsets = [0, 88], sizes = [8, 8], strides = [1, 1]} : vector<8x96xf32> to vector<8x8xf32>
    %cst_110 = arith.constant dense<0.000000e+00> : vector<8x8xf32>
    %301 = tpu.matmul %298, %299, %cst_110 {dimension_numbers = #tpu.dot_dimension_numbers<[1], [1], [0], [0], [0, 0, 1, 0], [], []>} : vector<8x8xf32>, vector<8x8xf32>, vector<8x8xf32> -> vector<8x8xf32>
    %cst_111 = arith.constant dense<0xFF800000> : vector<8xf32>
    %302 = vector.multi_reduction <maximumf>, %301, %cst_111 [1] : vector<8x8xf32> to vector<8xf32>
    %303 = vector.shape_cast %302 : vector<8xf32> to vector<8x1xf32>
    %304 = vector.broadcast %303 : vector<8x1xf32> to vector<8x8xf32>
    %305 = arith.subf %301, %304 : vector<8x8xf32>
    %306 = math.exp %305 : vector<8x8xf32>
    %cst_112 = arith.constant dense<0.000000e+00> : vector<8xf32>
    %307 = vector.multi_reduction <add>, %306, %cst_112 [1] : vector<8x8xf32> to vector<8xf32>
    %308 = vector.shape_cast %307 : vector<8xf32> to vector<8x1xf32>
    %309 = vector.broadcast %308 : vector<8x1xf32> to vector<8x8xf32>
    %310 = arith.divf %306, %309 : vector<8x8xf32>
    %cst_113 = arith.constant dense<0.000000e+00> : vector<8x8xf32>
    %311 = tpu.matmul %310, %300, %cst_113 {dimension_numbers = #tpu.dot_dimension_numbers<[1], [0], [0], [1], [0, 0, 1, 1], [], []>} : vector<8x8xf32>, vector<8x8xf32>, vector<8x8xf32> -> vector<8x8xf32>
    %312 = vector.extract_strided_slice %171 {offsets = [24, 0], sizes = [8, 32], strides = [1, 1]} : vector<32x32xf32> to vector<8x32xf32>
    %cst_114 = arith.constant dense<0.000000e+00> : vector<8x32xf32>
    %313 = tpu.matmul %311, %312, %cst_114 {dimension_numbers = #tpu.dot_dimension_numbers<[1], [0], [0], [1], [0, 0, 1, 1], [], []>} : vector<8x8xf32>, vector<8x32xf32>, vector<8x32xf32> -> vector<8x32xf32>
    %314 = arith.addf %297, %313 : vector<8x32xf32>
    %c0_115 = arith.constant 0 : index
    %c0_116 = arith.constant 0 : index
    %315 = vector.load %arg12[%c0_115, %c0_116] : memref<1x32xf32, #tpu.memory_space<vmem>>, vector<1x32xf32>
    %316 = vector.broadcast %315 : vector<1x32xf32> to vector<8x32xf32>
    %317 = arith.addf %314, %316 : vector<8x32xf32>
    %318 = tpu.concatenate %244, %317 in 0 : vector<8x32xf32>, vector<8x32xf32> -> vector<16x32xf32>
    %c0_117 = arith.constant 0 : index
    %c0_118 = arith.constant 0 : index
    %319 = vector.load %arg13[%c0_117, %c0_118] : memref<32x64xf32, #tpu.memory_space<vmem>>, vector<32x64xf32>
    %cst_119 = arith.constant dense<0.000000e+00> : vector<16x64xf32>
    %320 = tpu.matmul %318, %319, %cst_119 {dimension_numbers = #tpu.dot_dimension_numbers<[1], [0], [0], [1], [0, 0, 1, 1], [], []>} : vector<16x32xf32>, vector<32x64xf32>, vector<16x64xf32> -> vector<16x64xf32>
    %c0_120 = arith.constant 0 : index
    %c0_121 = arith.constant 0 : index
    %321 = vector.load %arg14[%c0_120, %c0_121] : memref<1x64xf32, #tpu.memory_space<vmem>>, vector<1x64xf32>
    %322 = vector.broadcast %321 : vector<1x64xf32> to vector<16x64xf32>
    %323 = arith.addf %320, %322 : vector<16x64xf32>
    %cst_122 = arith.constant 0.000000e+00 : f32
    %324 = vector.broadcast %cst_122 : f32 to vector<16x64xf32>
    %325 = arith.maximumf %323, %324 : vector<16x64xf32>
    %c0_123 = arith.constant 0 : index
    %c0_124 = arith.constant 0 : index
    %326 = vector.load %arg15[%c0_123, %c0_124] : memref<64x32xf32, #tpu.memory_space<vmem>>, vector<64x32xf32>
    %cst_125 = arith.constant dense<0.000000e+00> : vector<16x32xf32>
    %327 = tpu.matmul %325, %326, %cst_125 {dimension_numbers = #tpu.dot_dimension_numbers<[1], [0], [0], [1], [0, 0, 1, 1], [], []>} : vector<16x64xf32>, vector<64x32xf32>, vector<16x32xf32> -> vector<16x32xf32>
    %c0_126 = arith.constant 0 : index
    %c0_127 = arith.constant 0 : index
    %328 = vector.load %arg16[%c0_126, %c0_127] : memref<1x32xf32, #tpu.memory_space<vmem>>, vector<1x32xf32>
    %329 = vector.broadcast %328 : vector<1x32xf32> to vector<16x32xf32>
    %330 = arith.addf %327, %329 : vector<16x32xf32>
    %331 = vector.extract_strided_slice %330 {offsets = [0, 0], sizes = [8, 32], strides = [1, 1]} : vector<16x32xf32> to vector<8x32xf32>
    %cst_128 = arith.constant dense<0.000000e+00> : vector<32xf32>
    %332 = vector.multi_reduction <add>, %331, %cst_128 [0] : vector<8x32xf32> to vector<32xf32>
    %333 = vector.shape_cast %332 : vector<32xf32> to vector<1x32xf32>
    %cst_129 = arith.constant 8.000000e+00 : f32
    %334 = vector.broadcast %cst_129 : f32 to vector<1x32xf32>
    %335 = arith.divf %333, %334 : vector<1x32xf32>
    %336 = vector.extract_strided_slice %330 {offsets = [8, 0], sizes = [8, 32], strides = [1, 1]} : vector<16x32xf32> to vector<8x32xf32>
    %cst_130 = arith.constant dense<0.000000e+00> : vector<32xf32>
    %337 = vector.multi_reduction <add>, %336, %cst_130 [0] : vector<8x32xf32> to vector<32xf32>
    %338 = vector.shape_cast %337 : vector<32xf32> to vector<1x32xf32>
    %cst_131 = arith.constant 8.000000e+00 : f32
    %339 = vector.broadcast %cst_131 : f32 to vector<1x32xf32>
    %340 = arith.divf %338, %339 : vector<1x32xf32>
    %341 = tpu.concatenate %335, %340 in 0 : vector<1x32xf32>, vector<1x32xf32> -> vector<2x32xf32>
    %c0_132 = arith.constant 0 : index
    %c0_133 = arith.constant 0 : index
    %342 = vector.load %arg17[%c0_132, %c0_133] : memref<2x32xf32, #tpu.memory_space<vmem>>, vector<2x32xf32>
    tpu.vector_store %arg17[%c0_132, %c0_133], %341 {strides = array<i32>} : memref<2x32xf32, #tpu.memory_space<vmem>>, vector<2x32xf32>,
    return
  }
}

</mosaic_0001>

<bundles_post_ra>
// kernel: tpu_custom_call.1
= control target key start
LH: loop header
LB: loop body
LE: loop exit
PB: predicated region body
PF: predicated region fallthrough
CT: control target
= control target key end

     0   :  { %s2811_s0 = inlined_call_operand.hbm [shape: f32[16,32], index: 0, kind: input, shape index: {}]   ;;  %s2812_s1 = inlined_call_operand.vmem [shape: f32[32,96], index: 1, kind: input, shape index: {}]   ;;  %s2813_s2 = inlined_call_operand.hbm [shape: f32[1,96], index: 2, kind: input, shape index: {}]   ;;  %s2814_s3 = inlined_call_operand.vmem [shape: f32[32,32], index: 3, kind: input, shape index: {}]   ;;  %s2815_s4 = inlined_call_operand.vmem [shape: f32[1,32], index: 4, kind: input, shape index: {}]   ;;  %s2816_s5 = inlined_call_operand.vmem [shape: f32[32,64], index: 5, kind: input, shape index: {}]   ;;  %s2817_s6 = inlined_call_operand.vmem [shape: f32[1,64], index: 6, kind: input, shape index: {}]   ;;  %s2818_s7 = inlined_call_operand.vmem [shape: f32[64,32], index: 7, kind: input, shape index: {}]   ;;  %s2819_s8 = inlined_call_operand.vmem [shape: f32[1,32], index: 8, kind: input, shape index: {}]   ;;  %s2820_s9 = inlined_call_operand.vmem [shape: f32[32,96], index: 9, kind: input, shape index: {}]   ;;  %s2821_s10 = inlined_call_operand.vmem [shape: f32[1,96], index: 10, kind: input, shape index: {}]   ;;  %s2822_s11 = inlined_call_operand.vmem [shape: f32[32,32], index: 11, kind: input, shape index: {}]   ;;  %s2823_s12 = inlined_call_operand.vmem [shape: f32[1,32], index: 12, kind: input, shape index: {}]   ;;  %s2824_s13 = inlined_call_operand.hbm [shape: f32[32,64], index: 13, kind: input, shape index: {}]   ;;  %s2825_s14 = inlined_call_operand.vmem [shape: f32[1,64], index: 14, kind: input, shape index: {}]   ;;  %s2826_s15 = inlined_call_operand.vmem [shape: f32[64,32], index: 15, kind: input, shape index: {}]   ;;  %s2827_s16 = inlined_call_operand.vmem [shape: f32[1,32], index: 16, kind: input, shape index: {}]   ;;  %s2828_s17 = inlined_call_operand.hbm [shape: f32[2,32], index: 17, kind: output, shape index: {}]  }
   0x1   :  { %2832 = sst [smem:[#allocation12_spill]] %s2811_s0 }
   0x2   :  { %2833 = sst [smem:[#allocation13_spill]] %s2812_s1 }
   0x3   :  { %22 = vsyncpa [#allocation3], 0 }
   0x4   :  { %23 = vsyncpa [#allocation6], 0  ;;  %s45_s26 = sshll.u32 %s2813_s2, 4  ;;  %s46_s26 = int_to_ptr.hbm [resolvable:$true] %s45_s26 }
   0x5   :  { %24 = vsyncpa [#allocation4], 0  ;;  %s2296_s27 = smov [#allocation5]   ;;  %s2834_s30 = sld [smem:[#allocation12_spill]] }
   0x6   :  { %s47_s28 = sshll.u32 %s2296_s27, 4  ;;  %s2297_s19 = smov [#allocation2]   ;;  %s48_s28 = int_to_ptr.vmem [resolvable:$true] %s47_s28 }
   0x7   :  { %50 = dma.hbm_to_vmem [thread:$0]  %s46_s26, 16, %s48_s28, [#allocation6]  }
   0x8   :  { %s31_s1 = sshll.u32 %s2297_s19, 4  ;;  %s2298_s20 = smov 128   ;;  %s32_s1 = int_to_ptr.vmem [resolvable:$true] %s31_s1 }
   0x9   :  { %s2299_s21 = smov 8   ;;  %s75_s2 = sshll.u32 %s2824_s13, 4  ;;  %s76_s2 = int_to_ptr.hbm [resolvable:$true] %s75_s2 }
   0xa   :  { %s2300_s24 = smov [#allocation7]  }
   0xb   :  { %s29_s18 = sshll.u32 %s2834_s30, 4  ;;  %s77_s25 = sshll.u32 %s2300_s24, 4  ;;  %s30_s18 = int_to_ptr.hbm [resolvable:$true] %s29_s18  ;;  %s78_s25 = int_to_ptr.vmem [resolvable:$true] %s77_s25 }
   0xc   :  { %37 = dma.hbm_to_vmem [thread:$0]  %s30_s18, 256, %s32_s1, [#allocation3], %s2298_s20, %s2298_s20, %s2299_s21  }
   0xd   :  { %83 = dma.hbm_to_vmem [thread:$0]  %s76_s2, 512, %s78_s25, [#allocation6], %s2298_s20, %s2298_s20, %s2299_s21  }
   0xe   :  { %2290 = dma.done.wait [#allocation3], 256  }
   0xf   :  { %2291 = vsyncadd [#allocation3], 4294967040 }
  0x10   :  { %2292 = dma.done.wait [#allocation6], 528  }
  0x11   :  { %2293 = vsyncadd [#allocation6], 4294966768  ;;  %s2835_s28 = sld [smem:[#allocation13_spill]]  ;;  %v102_v4 = vld [vmem:[#allocation2] sm:$0xff]  ;;  %vm112_vm0 = vcmask 261120   ;;  %s2301_s1 = smov 120  }
  0x12   :  { %v2120_v5 = vld [vmem:[#allocation5] ss:$0 sm:$0xff]  ;;  %s2302_s20 = smov 96   ;;  %s2303_s21 = smov 88   ;;  %v103_v8 = vld [vmem:[#allocation2 + $0x8] sm:$0xff]  ;;  %vm149_vm1 = vcmask 64512  }
  0x13   :  { %s2304_s22 = smov 112   ;;  %s2830_s23 = smov 72   ;;  %v2466_v46 = vld [vmem:[%s2814_s3 + $0x8] sm:$0xff]  ;;  %v142_v59 = vld [vmem:[%s2814_s3] sm:$0xff] }
  0x14   :  { %s2306_s2 = smov 64   ;;  %s2307_s24 = smov 56  }
  0x15   :  { %s2308_s25 = smov 80   ;;  %s2309_s0 = smov 48  }
  0x16   :  { %s2310_s30 = smov 104   ;;  %s2311_s19 = smov 40  }
  0x17   :  { %v107_v0 = vld [vmem:[%s2835_s28 + $0x18] sm:$0xff]  ;;  %v106_v1 = vld [vmem:[%s2835_s28 + $0x10] sm:$0xff]  ;;  %v105_v2 = vld [vmem:[%s2835_s28 + $0x8] sm:$0xff] }
  0x18   :  { %131 = vmatpush.msra.mxu0 %v107_v0  ;;  %v104_v3 = vld [vmem:[%s2835_s28] sm:$0xff] }
  0x1a   :  { %132 = vmatpush.msra.mxu0 %v106_v1 }
  0x1c   :  { %133 = vmatpush.msra.mxu0 %v105_v2 }
  0x1e   :  { %134 = vmatpush.msra.mxu0 %v104_v3 }
  0x1f   :  { %2026 = vmatmul.msk.f32.vlgmr.msra.gmra.mxu0 %vm112_vm0, %v102_v4 }
  0x27   :  { %2027 = vmatmul.msk.f32.gmra.mxu0 %vm112_vm0, %v103_v8 }
  0x9c   :  { %v136_v6 = vpop.f32.mrf.mxu0 }
  0x9d   :  { %v2426_v7 = vadd.f32 %v2120_v5, %v136_v6 }
  0x9f   :  { %224 = vrot.lane.b32.xlu1 %v2426_v7, %s2301_s1  ;;  %147 = vrot.lane.b32.xlu0 %v2426_v7, %s2302_s20 }
  0xa4   :  { %v139_v16 = vpop.f32.mrf.mxu0 }
  0xa5   :  { %v2444_v17 = vadd.f32 %v2120_v5, %v139_v16 }
  0xa7   :  { %226 = vrot.lane.b32.xlu0 %v2426_v7, %s2303_s21 }
 0x111   :  { %v148_v9 = vpop.permute.xlu0 %147  ;;  %v225_v11 = vpop.permute.xlu1 %224 }
 0x112   :  { %2028 = vmatpush.xpose.msk.msra.mxu1 %vm149_vm1, %v148_v9 }
 0x115   :  { %2029 = vmatmul.msk.f32.vlgmr.msra.gmra.mxu1 %vm149_vm1, %v2426_v7 }
 0x119   :  { %v227_v10 = vpop.permute.xlu0 %226 }
 0x11a   :  { %2031 = vmatpush.xpose.msk.msra.mxu3 %vm149_vm1, %v227_v10 }
 0x11d   :  { %2032 = vmatmul.msk.f32.vlgmr.msra.gmra.mxu3 %vm149_vm1, %v225_v11 }
 0x11e   :  { %343 = vmatpush.msrb.mxu3 %v142_v59 }
 0x192   :  { %v171_v12 = vpop.f32.mrf.mxu1 }
 0x193   :  { %v174_v13 = vsel %vm149_vm1, %v171_v12, -inf }
 0x194   :  { %175 = vmax.xlane.f32.xlu1 %v174_v13 }
 0x1a0   :  { %v249_v14 = vpop.f32.mrf.mxu3 }
 0x1a1   :  { %v252_v15 = vsel %vm149_vm1, %v249_v14, -inf }
 0x1a2   :  { %253 = vmax.xlane.f32.xlu2 %v252_v15 }
 0x1ad   :  { %348 = vrot.lane.b32.xlu1 %v2426_v7, %s2304_s22 }
 0x1b5   :  { %558 = vrot.lane.b32.xlu1 %v2444_v17, %s2302_s20 }
 0x1bd   :  { %452 = vrot.lane.b32.xlu1 %v2426_v7, %s2830_s23 }
 0x207   :  { %v176_v18 = vpop.xlane.xlu1 %175 }
 0x208   :  { %v177_v19 = vsub.f32 %v171_v12, %v176_v18 }
 0x20a   :  { %v178_v20 = vmul.f32 1.442695, %v177_v19 }
 0x20c   :  { %2128 = vpow2.f32 %v178_v20 }
 0x212   :  { %v2129_v21 = vpop.eup %2128 }
 0x213   :  { %v180_v22 = vsel %vm149_vm1, %v2129_v21, 0.0 }
 0x214   :  { %181 = vadd.xlane.f32.xlu2 %v180_v22 }
 0x215   :  { %v254_v23 = vpop.xlane.xlu2 %253 }
 0x216   :  { %v255_v24 = vsub.f32 %v249_v14, %v254_v23  ;;  %v144_v23 = vld [vmem:[%s2814_s3 + $0x10] sm:$0xff] }
 0x217   :  { %444 = vmatpush.msra.mxu3 %v144_v23 }
 0x218   :  { %v256_v25 = vmul.f32 1.442695, %v255_v24 }
 0x21a   :  { %2130 = vpow2.f32 %v256_v25 }
 0x21f   :  { %v2451_v26 = vpop.permute.xlu1 %348 }
 0x220   :  { %v2131_v27 = vpop.eup %2130 }
 0x221   :  { %v258_v28 = vsel %vm149_vm1, %v2131_v27, 0.0 }
 0x222   :  { %259 = vadd.xlane.f32.xlu0 %v258_v28 }
 0x227   :  { %v2454_v29 = vpop.permute.xlu1 %558 }
 0x22c   :  { %198 = vrot.lane.b32.xlu2 %v2426_v7, %s2306_s2 }
 0x22f   :  { %v453_v30 = vpop.permute.xlu1 %452 }
 0x230   :  { %2040 = vmatpush.xpose.msk.msrb.mxu0 %vm149_vm1, %v453_v30 }
 0x234   :  { %276 = vrot.lane.b32.xlu2 %v2426_v7, %s2307_s24 }
 0x23c   :  { %350 = vrot.lane.b32.xlu2 %v2426_v7, %s2308_s25 }
 0x287   :  { %v182_v31 = vpop.xlane.xlu2 %181 }
 0x288   :  { %2132 = vrcp.f32 %v182_v31  ;;  %v194_v36 = vand.u32 2147483648, %v182_v31  ;;  %v192_v38 = vand.u32 2147483647, %v182_v31  ;;  %vm188_vm3 = vweird.f32 %v182_v31 }
 0x28a   :  { %v195_v41 = vor.u32 1.1754944e-38, %v194_v36  ;;  %vm193_vm5 = vcmp.eq.f32.partialorder %v192_v38, 8.507059e+37 }
 0x28e   :  { %v2133_v32 = vpop.eup %2132 }
 0x28f   :  { %v184_v33 = vmul.f32 %v2133_v32, %v182_v31  ;;  %v199_v34 = vpop.permute.xlu2 %198  ;;  %vm189_vm2 = vweird.f32 %v2133_v32 }
 0x290   :  { %219 = vmatpush.msra.mxu2 %v199_v34  ;;  %vm190_vm4 = vmor %vm188_vm3, %vm189_vm2 }
 0x291   :  { %v185_v35 = vsub.f32 1.0, %v184_v33 }
 0x293   :  { %v186_v37 = vmul.f32 %v2133_v32, %v185_v35 }
 0x295   :  { %v260_v39 = vpop.xlane.xlu0 %259  ;;  %v187_v40 = vadd.f32 %v2133_v32, %v186_v37 }
 0x296   :  { %2134 = vrcp.f32 %v260_v39  ;;  %v272_v50 = vand.u32 2147483648, %v260_v39  ;;  %v270_v52 = vand.u32 2147483647, %v260_v39  ;;  %vm266_vm7 = vweird.f32 %v260_v39 }
 0x297   :  { %v277_v42 = vpop.permute.xlu2 %276  ;;  %v191_v43 = vsel %vm190_vm4, %v2133_v32, %v187_v40 }
 0x298   :  { %297 = vmatpush.msrb.mxu2 %v277_v42  ;;  %v196_v44 = vsel %vm193_vm5, %v195_v41, %v191_v43  ;;  %v273_v54 = vor.u32 1.1754944e-38, %v272_v50  ;;  %vm271_vm9 = vcmp.eq.f32.partialorder %v270_v52, 8.507059e+37 }
 0x299   :  { %v197_v45 = vmul.f32 %v2129_v21, %v196_v44 }
 0x29b   :  { %2030 = vmatmul.msk.f32.vlgmr.msra.gmra.mxu2 %vm149_vm1, %v197_v45 }
 0x29c   :  { %v2135_v47 = vpop.eup %2134  ;;  %320 = vmatpush.msra.mxu2 %v2466_v46 }
 0x29d   :  { %v262_v48 = vmul.f32 %v2135_v47, %v260_v39  ;;  %vm267_vm6 = vweird.f32 %v2135_v47 }
 0x29e   :  { %vm268_vm8 = vmor %vm266_vm7, %vm267_vm6 }
 0x29f   :  { %v263_v49 = vsub.f32 1.0, %v262_v48  ;;  %v351_v58 = vpop.permute.xlu2 %350 }
 0x2a1   :  { %v264_v51 = vmul.f32 %v2135_v47, %v263_v49 }
 0x2a3   :  { %v265_v53 = vadd.f32 %v2135_v47, %v264_v51 }
 0x2a5   :  { %v269_v55 = vsel %vm268_vm8, %v2135_v47, %v265_v53 }
 0x2a6   :  { %v274_v56 = vsel %vm271_vm9, %v273_v54, %v269_v55 }
 0x2a7   :  { %v275_v57 = vmul.f32 %v2131_v27, %v274_v56 }
 0x2a9   :  { %2033 = vmatmul.msk.f32.vlgmr.msrb.gmra.mxu2 %vm149_vm1, %v275_v57 }
 0x2aa   :  { %2036 = vmatpush.xpose.msk.msrb.mxu2 %vm149_vm1, %v351_v58 }
 0x31e   :  { %v221_v60 = vpop.f32.mrf.mxu2 }
 0x31f   :  { %2035 = vmatmul.msk.f32.vlgmr.msrb.gmra.mxu3 %vm149_vm1, %v221_v60 }
 0x320   :  { %2044 = vmatpush.xpose.msk.msrb.mxu3 %vm149_vm1, %v2454_v29 }
 0x32c   :  { %v299_v61 = vpop.f32.mrf.mxu2 }
 0x32d   :  { %2034 = vmatmul.msk.f32.vlgmr.msra.gmra.mxu2 %vm149_vm1, %v299_v61 }
 0x335   :  { %2037 = vmatmul.msk.f32.vlgmr.msrb.gmra.mxu2 %vm149_vm1, %v2451_v26 }
 0x3a2   :  { %v345_v27 = vpop.f32.mrf.mxu3 }
 0x3b0   :  { %v322_v62 = vpop.f32.mrf.mxu2 }
 0x3b1   :  { %v346_v30 = vadd.f32 %v345_v27, %v322_v62 }
 0x3b8   :  { %v373_v63 = vpop.f32.mrf.mxu2 }
 0x3b9   :  { %v376_v0 = vsel %vm149_vm1, %v373_v63, -inf }
 0x3ba   :  { %377 = vmax.xlane.f32.xlu2 %v376_v0 }
 0x3d2   :  { %608 = vrot.lane.b32.xlu2 %v2444_v17, %s2306_s2 }
 0x42d   :  { %v378_v1 = vpop.xlane.xlu2 %377 }
 0x42e   :  { %v379_v2 = vsub.f32 %v373_v63, %v378_v1 }
 0x430   :  { %v380_v3 = vmul.f32 1.442695, %v379_v2 }
 0x432   :  { %2136 = vpow2.f32 %v380_v3 }
 0x435   :  { %v609_v6 = vpop.permute.xlu2 %608 }
 0x436   :  { %629 = vmatpush.msra.mxu0 %v609_v6 }
 0x438   :  { %v2137_v4 = vpop.eup %2136 }
 0x439   :  { %v382_v5 = vsel %vm149_vm1, %v2137_v4, 0.0 }
 0x43a   :  { %383 = vadd.xlane.f32.xlu0 %v382_v5 }
 0x44e   :  { %400 = vrot.lane.b32.xlu0 %v2426_v7, %s2309_s0 }
 0x456   :  { %450 = vrot.lane.b32.xlu0 %v2426_v7, %s2310_s30 }
 0x4ad   :  { %v384_v8 = vpop.xlane.xlu0 %383 }
 0x4ae   :  { %2138 = vrcp.f32 %v384_v8  ;;  %v396_v12 = vand.u32 2147483648, %v384_v8  ;;  %v394_v14 = vand.u32 2147483647, %v384_v8  ;;  %vm390_vm11 = vweird.f32 %v384_v8 }
 0x4b0   :  { %v397_v16 = vor.u32 1.1754944e-38, %v396_v12  ;;  %vm395_vm13 = vcmp.eq.f32.partialorder %v394_v14, 8.507059e+37 }
 0x4b4   :  { %v2139_v9 = vpop.eup %2138 }
 0x4b5   :  { %v386_v10 = vmul.f32 %v2139_v9, %v384_v8  ;;  %vm391_vm10 = vweird.f32 %v2139_v9 }
 0x4b6   :  { %vm392_vm12 = vmor %vm390_vm11, %vm391_vm10 }
 0x4b7   :  { %v387_v11 = vsub.f32 1.0, %v386_v10 }
 0x4b9   :  { %v388_v13 = vmul.f32 %v2139_v9, %v387_v11 }
 0x4bb   :  { %v389_v15 = vadd.f32 %v2139_v9, %v388_v13 }
 0x4bd   :  { %v393_v18 = vsel %vm392_vm12, %v2139_v9, %v389_v15  ;;  %v2528_v9 = vld [vmem:[%s2814_s3 + $0x18] sm:$0xff] }
 0x4be   :  { %v398_v19 = vsel %vm395_vm13, %v397_v16, %v393_v18  ;;  %v966_v18 = vld [vmem:[%s2816_s5 + $0x18] sm:$0xff] }
 0x4bf   :  { %v399_v20 = vmul.f32 %v2137_v4, %v398_v19  ;;  %v965_v19 = vld [vmem:[%s2816_s5 + $0x10] sm:$0xff] }
 0x4c0   :  { %v401_v21 = vpop.permute.xlu0 %400 }
 0x4c1   :  { %421 = vmatpush.msrb.mxu1 %v401_v21  ;;  %v963_v21 = vld [vmem:[%s2816_s5] sm:$0xff] }
 0x4c2   :  { %2038 = vmatmul.msk.f32.vlgmr.msrb.gmra.mxu1 %vm149_vm1, %v399_v20  ;;  %v964_v20 = vld [vmem:[%s2816_s5 + $0x8] sm:$0xff] }
 0x4c3   :  { %546 = vmatpush.msra.mxu1 %v2528_v9 }
 0x4c8   :  { %v451_v22 = vpop.permute.xlu0 %450 }
 0x4c9   :  { %2041 = vmatmul.msk.f32.vlgmr.msrb.gmra.mxu0 %vm149_vm1, %v451_v22 }
 0x4ca   :  { %753 = vmatpush.msrb.mxu0 %v142_v59 }
 0x53f   :  { %v423_v24 = vpop.f32.mrf.mxu1 }
 0x540   :  { %2039 = vmatmul.msk.f32.vlgmr.msra.gmra.mxu3 %vm149_vm1, %v423_v24  ;;  %v2553_v24 = vld [vmem:[%s2815_s4] ss:$0 sm:$0xff] }
 0x541   :  { %730 = vmatpush.msra.mxu3 %v2466_v46 }
 0x546   :  { %v475_v25 = vpop.f32.mrf.mxu0 }
 0x547   :  { %v478_v26 = vsel %vm149_vm1, %v475_v25, -inf }
 0x548   :  { %2045 = vmatmul.msk.f32.vlgmr.msrb.gmra.mxu3 %vm149_vm1, %v2444_v17  ;;  %479 = vmax.xlane.f32.xlu2 %v478_v26 }
 0x549   :  { %854 = vmatpush.msrb.mxu3 %v144_v23 }
 0x560   :  { %760 = vrot.lane.b32.xlu2 %v2444_v17, %s2308_s25 }
 0x5bb   :  { %v480_v28 = vpop.xlane.xlu2 %479 }
 0x5bc   :  { %v481_v29 = vsub.f32 %v475_v25, %v480_v28 }
 0x5be   :  { %v482_v33 = vmul.f32 1.442695, %v481_v29 }
 0x5c0   :  { %2140 = vpow2.f32 %v482_v33 }
 0x5c3   :  { %v446_v31 = vpop.f32.mrf.mxu3  ;;  %v761_v5 = vpop.permute.xlu2 %760 }
 0x5c4   :  { %v2501_v32 = vadd.f32 %v446_v31, %v346_v30 }
 0x5c6   :  { %v2141_v36 = vpop.eup %2140 }
 0x5c7   :  { %v484_v37 = vsel %vm149_vm1, %v2141_v36, 0.0 }
 0x5cb   :  { %v581_v34 = vpop.f32.mrf.mxu3 }
 0x5cc   :  { %v584_v35 = vsel %vm149_vm1, %v581_v34, -inf }
 0x5cd   :  { %585 = vmax.xlane.f32.xlu1 %v584_v35 }
 0x5d5   :  { %485 = vadd.xlane.f32.xlu1 %v484_v37 }
 0x5ee   :  { %636 = vrot.lane.b32.xlu1 %v2444_v17, %s2303_s21 }
 0x5f6   :  { %862 = vrot.lane.b32.xlu1 %v2444_v17, %s2830_s23 }
 0x640   :  { %v586_v38 = vpop.xlane.xlu1 %585 }
 0x641   :  { %v587_v39 = vsub.f32 %v581_v34, %v586_v38 }
 0x643   :  { %v588_v40 = vmul.f32 1.442695, %v587_v39 }
 0x645   :  { %2142 = vpow2.f32 %v588_v40 }
 0x648   :  { %v486_v43 = vpop.xlane.xlu1 %485 }
 0x649   :  { %2144 = vrcp.f32 %v486_v43  ;;  %v498_v51 = vand.u32 2147483648, %v486_v43  ;;  %vm492_vm15 = vweird.f32 %v486_v43  ;;  %v496_v54 = vand.u32 2147483647, %v486_v43 }
 0x64b   :  { %v2143_v41 = vpop.eup %2142  ;;  %v499_v59 = vor.u32 1.1754944e-38, %v498_v51  ;;  %vm497_vm5 = vcmp.eq.f32.partialorder %v496_v54, 8.507059e+37 }
 0x64c   :  { %v590_v42 = vsel %vm149_vm1, %v2143_v41, 0.0 }
 0x64d   :  { %591 = vadd.xlane.f32.xlu0 %v590_v42 }
 0x64f   :  { %v2145_v44 = vpop.eup %2144 }
 0x650   :  { %v488_v45 = vmul.f32 %v2145_v44, %v486_v43  ;;  %vm493_vm14 = vweird.f32 %v2145_v44 }
 0x651   :  { %vm494_vm2 = vmor %vm492_vm15, %vm493_vm14 }
 0x652   :  { %v489_v47 = vsub.f32 1.0, %v488_v45 }
 0x654   :  { %v490_v48 = vmul.f32 %v2145_v44, %v489_v47 }
 0x660   :  { %v637_v52 = vpop.permute.xlu1 %636 }
 0x661   :  { %502 = vrot.lane.b32.xlu0 %v2426_v7, %s2311_s19  ;;  %v491_v7 = vadd.f32 %v2145_v44, %v490_v48 }
 0x663   :  { %v495_v58 = vsel %vm494_vm2, %v2145_v44, %v491_v7 }
 0x664   :  { %v500_v62 = vsel %vm497_vm5, %v499_v59, %v495_v58 }
 0x665   :  { %v501_v3 = vmul.f32 %v2141_v36, %v500_v62 }
 0x668   :  { %v863_v4 = vpop.permute.xlu1 %862 }
 0x669   :  { %634 = vrot.lane.b32.xlu0 %v2444_v17, %s2301_s1 }
 0x671   :  { %758 = vrot.lane.b32.xlu0 %v2444_v17, %s2304_s22 }
 0x679   :  { %860 = vrot.lane.b32.xlu0 %v2444_v17, %s2310_s30 }
 0x6c0   :  { %v592_v46 = vpop.xlane.xlu0 %591 }
 0x6c1   :  { %2146 = vrcp.f32 %v592_v46  ;;  %v604_v55 = vand.u32 2147483648, %v592_v46  ;;  %v602_v57 = vand.u32 2147483647, %v592_v46  ;;  %vm598_vm4 = vweird.f32 %v592_v46 }
 0x6c3   :  { %v605_v61 = vor.u32 1.1754944e-38, %v604_v55  ;;  %vm603_vm7 = vcmp.eq.f32.partialorder %v602_v57, 8.507059e+37 }
 0x6c7   :  { %v2147_v49 = vpop.eup %2146 }
 0x6c8   :  { %v594_v50 = vmul.f32 %v2147_v49, %v592_v46  ;;  %vm599_vm3 = vweird.f32 %v2147_v49 }
 0x6c9   :  { %vm600_vm6 = vmor %vm598_vm4, %vm599_vm3 }
 0x6ca   :  { %v595_v53 = vsub.f32 1.0, %v594_v50 }
 0x6cc   :  { %v596_v56 = vmul.f32 %v2147_v49, %v595_v53 }
 0x6ce   :  { %v597_v60 = vadd.f32 %v2147_v49, %v596_v56 }
 0x6d0   :  { %v601_v63 = vsel %vm600_vm6, %v2147_v49, %v597_v60  ;;  %vm1014_vm6 = vcmask 523264  }
 0x6d1   :  { %v606_v0 = vsel %vm603_vm7, %v605_v61, %v601_v63 }
 0x6d2   :  { %v607_v1 = vmul.f32 %v2143_v41, %v606_v0 }
 0x6d3   :  { %v503_v2 = vpop.permute.xlu0 %502 }
 0x6d4   :  { %523 = vmatpush.msra.mxu2 %v503_v2  ;;  %2046 = vmatmul.msk.f32.vlgmr.msra.gmra.mxu0 %vm149_vm1, %v607_v1 }
 0x6d5   :  { %2056 = vmatpush.xpose.msk.msra.mxu0 %vm149_vm1, %v863_v4  ;;  %2042 = vmatmul.msk.f32.vlgmr.msra.gmra.mxu2 %vm149_vm1, %v501_v3 }
 0x6d6   :  { %2047 = vmatpush.xpose.msk.msrb.mxu2 %vm149_vm1, %v637_v52 }
 0x6da   :  { %2052 = vmatpush.xpose.msk.msra.mxu2 %vm149_vm1, %v761_v5 }
 0x6db   :  { %v635_v6 = vpop.permute.xlu0 %634 }
 0x6dd   :  { %2048 = vmatmul.msk.f32.vlgmr.msrb.gmra.mxu2 %vm149_vm1, %v635_v6 }
 0x6e3   :  { %v759_v8 = vpop.permute.xlu0 %758 }
 0x6e5   :  { %2053 = vmatmul.msk.f32.vlgmr.msra.gmra.mxu2 %vm149_vm1, %v759_v8 }
 0x6eb   :  { %v861_v12 = vpop.permute.xlu0 %860 }
 0x751   :  { %v631_v10 = vpop.f32.mrf.mxu0 }
 0x752   :  { %2051 = vmatmul.msk.f32.vlgmr.msrb.gmra.mxu0 %vm149_vm1, %v631_v10 }
 0x753   :  { %989 = vmatpush.msrb.mxu0 %v966_v18 }
 0x755   :  { %990 = vmatpush.msrb.mxu0 %v965_v19 }
 0x757   :  { %991 = vmatpush.msrb.mxu0 %v964_v20 }
 0x758   :  { %v525_v11 = vpop.f32.mrf.mxu2 }
 0x759   :  { %2043 = vmatmul.msk.f32.vlgmr.msra.gmra.mxu1 %vm149_vm1, %v525_v11  ;;  %992 = vmatpush.msrb.mxu0 %v963_v21  ;;  %v1009_v21 = vld [vmem:[%s2818_s7 + $0x38] sm:$0xff] }
 0x75a   :  { %2057 = vmatmul.msk.f32.vlgmr.msra.gmra.mxu0 %vm149_vm1, %v861_v12 }
 0x75b   :  { %1029 = vmatpush.msra.mxu0 %v1009_v21 }
 0x760   :  { %v659_v13 = vpop.f32.mrf.mxu2 }
 0x761   :  { %v662_v14 = vsel %vm149_vm1, %v659_v13, -inf }
 0x762   :  { %663 = vmax.xlane.f32.xlu1 %v662_v14 }
 0x768   :  { %v783_v15 = vpop.f32.mrf.mxu2 }
 0x769   :  { %v786_v16 = vsel %vm149_vm1, %v783_v15, -inf }
 0x76a   :  { %787 = vmax.xlane.f32.xlu0 %v786_v16 }
 0x7cf   :  { %v2548_v22 = vpop.f32.mrf.mxu0 }
 0x7d5   :  { %v664_v23 = vpop.xlane.xlu1 %663 }
 0x7d6   :  { %v665_v25 = vsub.f32 %v659_v13, %v664_v23  ;;  %v548_v26 = vpop.f32.mrf.mxu1 }
 0x7d7   :  { %v551_v27 = vadd.f32 %v548_v26, %v2501_v32  ;;  %v885_v28 = vpop.f32.mrf.mxu0  ;;  %v1007_v26 = vld [vmem:[%s2818_s7 + $0x28] sm:$0xff] }
 0x7d8   :  { %v666_v30 = vmul.f32 1.442695, %v665_v25  ;;  %v888_v29 = vsel %vm149_vm1, %v885_v28, -inf  ;;  %v1008_v25 = vld [vmem:[%s2818_s7 + $0x30] sm:$0xff] }
 0x7d9   :  { %v556_v31 = vadd.f32 %v2553_v24, %v551_v27  ;;  %889 = vmax.xlane.f32.xlu2 %v888_v29  ;;  %1030 = vmatpush.msra.mxu0 %v1008_v25  ;;  %v1006_v27 = vld [vmem:[%s2818_s7 + $0x20] sm:$0xff]  ;;  %v1003_v29 = vld [vmem:[%s2818_s7 + $0x8] sm:$0xff] }
 0x7da   :  { %2148 = vpow2.f32 %v666_v30  ;;  %v1004_v30 = vld [vmem:[%s2818_s7 + $0x10] sm:$0xff] }
 0x7db   :  { %2060 = vmatmul.msk.f32.vlgmr.msrb.gmra.mxu0 %vm112_vm0, %v556_v31  ;;  %v1002_v31 = vld [vmem:[%s2818_s7] sm:$0xff] }
 0x7dc   :  { %1031 = vmatpush.msra.mxu0 %v1007_v26 }
 0x7dd   :  { %v788_v33 = vpop.xlane.xlu0 %787 }
 0x7de   :  { %v789_v34 = vsub.f32 %v783_v15, %v788_v33  ;;  %1032 = vmatpush.msra.mxu0 %v1006_v27 }
 0x7e0   :  { %v2149_v35 = vpop.eup %2148  ;;  %v790_v36 = vmul.f32 1.442695, %v789_v34 }
 0x7e1   :  { %v668_v37 = vsel %vm149_vm1, %v2149_v35, 0.0 }
 0x7e2   :  { %2150 = vpow2.f32 %v790_v36  ;;  %669 = vadd.xlane.f32.xlu1 %v668_v37 }
 0x7e8   :  { %v2151_v38 = vpop.eup %2150 }
 0x7e9   :  { %v792_v32 = vsel %vm149_vm1, %v2151_v38, 0.0 }
 0x7ea   :  { %793 = vadd.xlane.f32.xlu0 %v792_v32  ;;  %v2122_v32 = vld [vmem:[%s2817_s6] ss:$0 sm:$0xff] }
 0x7f1   :  { %686 = vrot.lane.b32.xlu2 %v2444_v17, %s2307_s24 }
 0x7fe   :  { %810 = vrot.lane.b32.xlu0 %v2444_v17, %s2309_s0 }
 0x84c   :  { %v890_v39 = vpop.xlane.xlu2 %889 }
 0x84d   :  { %v891_v40 = vsub.f32 %v885_v28, %v890_v39  ;;  %v1005_v28 = vld [vmem:[%s2818_s7 + $0x18] sm:$0xff] }
 0x84e   :  { %1033 = vmatpush.msra.mxu0 %v1005_v28 }
 0x84f   :  { %v892_v41 = vmul.f32 1.442695, %v891_v40 }
 0x850   :  { %1034 = vmatpush.msra.mxu0 %v1004_v30 }
 0x851   :  { %2152 = vpow2.f32 %v892_v41 }
 0x852   :  { %1035 = vmatpush.msra.mxu0 %v1003_v29 }
 0x854   :  { %v687_v42 = vpop.permute.xlu2 %686  ;;  %1036 = vmatpush.msra.mxu0 %v1002_v31 }
 0x855   :  { %v670_v43 = vpop.xlane.xlu1 %669  ;;  %707 = vmatpush.msrb.mxu1 %v687_v42 }
 0x856   :  { %2154 = vrcp.f32 %v670_v43  ;;  %v682_v50 = vand.u32 2147483648, %v670_v43  ;;  %v680_v51 = vand.u32 2147483647, %v670_v43  ;;  %vm676_vm9 = vweird.f32 %v670_v43 }
 0x857   :  { %v2153_v44 = vpop.eup %2152 }
 0x858   :  { %v894_v45 = vsel %vm149_vm1, %v2153_v44, 0.0  ;;  %v683_v54 = vor.u32 1.1754944e-38, %v682_v50  ;;  %vm681_vm11 = vcmp.eq.f32.partialorder %v680_v51, 8.507059e+37  ;;  %v994_v40 = vpop.f32.mrf.mxu0 }
 0x859   :  { %895 = vadd.xlane.f32.xlu1 %v894_v45  ;;  %v995_v41 = vadd.f32 %v2122_v32, %v994_v40 }
 0x85b   :  { %v1000_v42 = vmax.f32 %v995_v41, 0.0 }
 0x85c   :  { %v2155_v46 = vpop.eup %2154 }
 0x85d   :  { %v672_v47 = vmul.f32 %v2155_v46, %v670_v43  ;;  %v794_v48 = vpop.xlane.xlu0 %793  ;;  %vm677_vm8 = vweird.f32 %v2155_v46  ;;  %v1046_v43 = vld [vmem:[%s2820_s9 + $0x10] sm:$0xff] }
 0x85e   :  { %2156 = vrcp.f32 %v794_v48  ;;  %vm678_vm10 = vmor %vm676_vm9, %vm677_vm8  ;;  %v806_v60 = vand.u32 2147483648, %v794_v48  ;;  %v804_v62 = vand.u32 2147483647, %v794_v48  ;;  %vm800_vm13 = vweird.f32 %v794_v48 }
 0x85f   :  { %v673_v49 = vsub.f32 1.0, %v672_v47 }
 0x860   :  { %v807_v0 = vor.u32 1.1754944e-38, %v806_v60  ;;  %vm805_vm15 = vcmp.eq.f32.partialorder %v804_v62, 8.507059e+37 }
 0x861   :  { %v674_v7 = vmul.f32 %v2155_v46, %v673_v49 }
 0x863   :  { %v675_v52 = vadd.f32 %v2155_v46, %v674_v7 }
 0x864   :  { %v2157_v53 = vpop.eup %2156 }
 0x865   :  { %v679_v55 = vsel %vm678_vm10, %v2155_v46, %v675_v52  ;;  %v796_v56 = vmul.f32 %v2157_v53, %v794_v48  ;;  %vm801_vm12 = vweird.f32 %v2157_v53  ;;  %v2123_v48 = vld [vmem:[%s2819_s8] ss:$0 sm:$0xff]  ;;  %s2836_s8 = smov 72  }
 0x866   :  { %v684_v57 = vsel %vm681_vm11, %v683_v54, %v679_v55  ;;  %vm802_vm14 = vmor %vm800_vm13, %vm801_vm12  ;;  %v2627_v52 = vld [vmem:[%s2821_s10] ss:$0 sm:$0xff] }
 0x867   :  { %v797_v58 = vsub.f32 1.0, %v796_v56  ;;  %v685_v59 = vmul.f32 %v2149_v35, %v684_v57 }
 0x869   :  { %v798_v61 = vmul.f32 %v2157_v53, %v797_v58  ;;  %2049 = vmatmul.msk.f32.vlgmr.msrb.gmra.mxu1 %vm149_vm1, %v685_v59 }
 0x86b   :  { %v799_v63 = vadd.f32 %v2157_v53, %v798_v61 }
 0x86d   :  { %v803_v1 = vsel %vm802_vm14, %v2157_v53, %v799_v63 }
 0x86e   :  { %v808_v2 = vsel %vm805_vm15, %v807_v0, %v803_v1 }
 0x86f   :  { %v809_v3 = vmul.f32 %v2151_v38, %v808_v2 }
 0x870   :  { %v811_v4 = vpop.permute.xlu0 %810 }
 0x871   :  { %831 = vmatpush.msra.mxu1 %v811_v4 }
 0x872   :  { %912 = vrot.lane.b32.xlu1 %v2444_v17, %s2311_s19  ;;  %2054 = vmatmul.msk.f32.vlgmr.msra.gmra.mxu1 %vm149_vm1, %v809_v3 }
 0x873   :  { %956 = vmatpush.msrb.mxu1 %v2528_v9 }
 0x8cc   :  { %v896_v5 = vpop.xlane.xlu1 %895 }
 0x8cd   :  { %2158 = vrcp.f32 %v896_v5  ;;  %v908_v13 = vand.u32 2147483648, %v896_v5  ;;  %vm902_vm3 = vweird.f32 %v896_v5  ;;  %v906_v14 = vand.u32 2147483647, %v896_v5 }
 0x8cf   :  { %v909_v16 = vor.u32 1.1754944e-38, %v908_v13  ;;  %vm907_vm5 = vcmp.eq.f32.partialorder %v906_v14, 8.507059e+37 }
 0x8d3   :  { %v2159_v6 = vpop.eup %2158 }
 0x8d4   :  { %v898_v8 = vmul.f32 %v2159_v6, %v896_v5  ;;  %vm903_vm2 = vweird.f32 %v2159_v6 }
 0x8d5   :  { %vm904_vm4 = vmor %vm902_vm3, %vm903_vm2 }
 0x8d6   :  { %v899_v10 = vsub.f32 1.0, %v898_v8 }
 0x8d8   :  { %v900_v11 = vmul.f32 %v2159_v6, %v899_v10 }
 0x8da   :  { %v901_v12 = vadd.f32 %v2159_v6, %v900_v11 }
 0x8dc   :  { %v905_v15 = vsel %vm904_vm4, %v2159_v6, %v901_v12 }
 0x8dd   :  { %v910_v17 = vsel %vm907_vm5, %v909_v16, %v905_v15  ;;  %v2670_v16 = vld [vmem:[%s2822_s11] sm:$0xff] }
 0x8de   :  { %v911_v19 = vmul.f32 %v2153_v44, %v910_v17  ;;  %v1044_v44 = vld [vmem:[%s2820_s9] sm:$0xff] }
 0x8e4   :  { %v913_v18 = vpop.permute.xlu1 %912 }
 0x8e5   :  { %933 = vmatpush.msrb.mxu2 %v913_v18 }
 0x8e6   :  { %v709_v9 = vpop.f32.mrf.mxu1  ;;  %2058 = vmatmul.msk.f32.vlgmr.msrb.gmra.mxu2 %vm149_vm1, %v911_v19 }
 0x8e7   :  { %2050 = vmatmul.msk.f32.vlgmr.msra.gmra.mxu3 %vm149_vm1, %v709_v9 }
 0x8ef   :  { %v833_v20 = vpop.f32.mrf.mxu1 }
 0x8f0   :  { %2055 = vmatmul.msk.f32.vlgmr.msrb.gmra.mxu3 %vm149_vm1, %v833_v20 }
 0x969   :  { %v935_v23 = vpop.f32.mrf.mxu2 }
 0x96a   :  { %2059 = vmatmul.msk.f32.vlgmr.msrb.gmra.mxu1 %vm149_vm1, %v935_v23  ;;  %v732_v33 = vpop.f32.mrf.mxu3 }
 0x96b   :  { %v756_v35 = vadd.f32 %v2548_v22, %v732_v33  ;;  %v1047_v22 = vld [vmem:[%s2820_s9 + $0x18] sm:$0xff] }
 0x96c   :  { %1070 = vmatpush.msra.mxu2 %v1047_v22 }
 0x96e   :  { %1071 = vmatpush.msra.mxu2 %v1046_v43 }
 0x973   :  { %v856_v34 = vpop.f32.mrf.mxu3 }
 0x974   :  { %v859_v36 = vadd.f32 %v856_v34, %v756_v35 }
 0x9e7   :  { %v958_v37 = vpop.f32.mrf.mxu1 }
 0x9e8   :  { %v961_v38 = vadd.f32 %v958_v37, %v859_v36 }
 0x9ea   :  { %v962_v39 = vadd.f32 %v2553_v24, %v961_v38  ;;  %v1045_v24 = vld [vmem:[%s2820_s9 + $0x8] sm:$0xff] }
 0x9eb   :  { %1072 = vmatpush.msra.mxu2 %v1045_v24 }
 0x9ec   :  { %2061 = vmatmul.msk.f32.gmra.mxu0 %vm112_vm0, %v962_v39 }
 0x9ed   :  { %1073 = vmatpush.msra.mxu2 %v1044_v44 }
 0x9f4   :  { %2062 = vmatmul.msk.f32.vlgmr.msra.gmra.mxu0 %vm1014_vm6, %v1000_v42 }
 0xa69   :  { %v997_v45 = vpop.f32.mrf.mxu0 }
 0xa6a   :  { %v998_v46 = vadd.f32 %v2122_v32, %v997_v45 }
 0xa6c   :  { %v1001_v47 = vmax.f32 %v998_v46, 0.0 }
 0xa6e   :  { %2063 = vmatmul.msk.f32.gmra.mxu0 %vm1014_vm6, %v1001_v47 }
 0xa71   :  { %v1038_v49 = vpop.f32.mrf.mxu0 }
 0xa72   :  { %v1039_v50 = vadd.f32 %v2123_v48, %v1038_v49  ;;  %v1082_v49 = vld [vmem:[%s2822_s11 + $0x8] sm:$0xff] }
 0xa74   :  { %2064 = vmatmul.msk.f32.vlgmr.msra.gmra.mxu2 %vm112_vm0, %v1039_v50 }
 0xaeb   :  { %v1041_v7 = vpop.f32.mrf.mxu0 }
 0xaec   :  { %v1042_v51 = vadd.f32 %v2123_v48, %v1041_v7 }
 0xaee   :  { %2065 = vmatmul.msk.f32.gmra.mxu2 %vm112_vm0, %v1042_v51 }
 0xaf7   :  { %v1075_v53 = vpop.f32.mrf.mxu2 }
 0xaf8   :  { %v2630_v54 = vadd.f32 %v2627_v52, %v1075_v53 }
 0xafa   :  { %1288 = vrot.lane.b32.xlu1 %v2630_v54, %s2308_s25  ;;  %1162 = vrot.lane.b32.xlu2 %v2630_v54, %s2301_s1 }
 0xafb   :  { %1164 = vrot.lane.b32.xlu0 %v2630_v54, %s2303_s21 }
 0xb02   :  { %1086 = vrot.lane.b32.xlu2 %v2630_v54, %s2302_s20 }
 0xb03   :  { %1286 = vrot.lane.b32.xlu0 %v2630_v54, %s2304_s22 }
 0xb54   :  { %v1163_v55 = vpop.permute.xlu2 %1162 }
 0xb5c   :  { %v1087_v56 = vpop.permute.xlu2 %1086 }
 0xb5d   :  { %2066 = vmatpush.xpose.msk.msra.mxu1 %vm149_vm1, %v1087_v56 }
 0xb60   :  { %2067 = vmatmul.msk.f32.vlgmr.msra.gmra.mxu1 %vm149_vm1, %v2630_v54 }
 0xb6c   :  { %v1289_v57 = vpop.permute.xlu1 %1288 }
 0xb6d   :  { %v1165_v58 = vpop.permute.xlu0 %1164  ;;  %2074 = vmatpush.xpose.msk.msrb.mxu0 %vm149_vm1, %v1289_v57 }
 0xb6e   :  { %2069 = vmatpush.xpose.msk.msra.mxu3 %vm149_vm1, %v1165_v58 }
 0xb71   :  { %2070 = vmatmul.msk.f32.vlgmr.msra.gmra.mxu3 %vm149_vm1, %v1163_v55  ;;  %v1078_v47 = vpop.f32.mrf.mxu2 }
 0xb72   :  { %1281 = vmatpush.msrb.mxu3 %v2670_v16  ;;  %v2679_v48 = vadd.f32 %v2627_v52, %v1078_v47 }
 0xb75   :  { %v1287_v59 = vpop.permute.xlu0 %1286 }
 0xb76   :  { %2075 = vmatmul.msk.f32.vlgmr.msrb.gmra.mxu0 %vm149_vm1, %v1287_v59 }
 0xbdd   :  { %v1109_v12 = vpop.f32.mrf.mxu1 }
 0xbde   :  { %v1112_v14 = vsel %vm149_vm1, %v1109_v12, -inf }
 0xbf3   :  { %v1311_v60 = vpop.f32.mrf.mxu0 }
 0xbf4   :  { %v1187_v61 = vpop.f32.mrf.mxu3  ;;  %v1314_v62 = vsel %vm149_vm1, %v1311_v60, -inf }
 0xbf5   :  { %1315 = vmax.xlane.f32.xlu0 %v1314_v62  ;;  %v1190_v63 = vsel %vm149_vm1, %v1187_v61, -inf  ;;  %v1083_v62 = vld [vmem:[%s2822_s11 + $0x10] sm:$0xff] }
 0xbf6   :  { %1191 = vmax.xlane.f32.xlu1 %v1190_v63 }
 0xc09   :  { %1214 = vrot.lane.b32.xlu0 %v2630_v54, %s2307_s24 }
 0xc11   :  { %1136 = vrot.lane.b32.xlu0 %v2630_v54, %s2306_s2 }
 0xc19   :  { %1388 = vrot.lane.b32.xlu0 %v2630_v54, %s2310_s30 }
 0xc68   :  { %v1316_v0 = vpop.xlane.xlu0 %1315 }
 0xc69   :  { %v1317_v1 = vsub.f32 %v1311_v60, %v1316_v0  ;;  %v1192_v2 = vpop.xlane.xlu1 %1191 }
 0xc6a   :  { %v1193_v3 = vsub.f32 %v1187_v61, %v1192_v2 }
 0xc6b   :  { %v1318_v4 = vmul.f32 1.442695, %v1317_v1 }
 0xc6c   :  { %v1194_v5 = vmul.f32 1.442695, %v1193_v3 }
 0xc6d   :  { %2160 = vpow2.f32 %v1318_v4 }
 0xc6e   :  { %2162 = vpow2.f32 %v1194_v5 }
 0xc73   :  { %v2657_v6 = vpop.eup %2160 }
 0xc74   :  { %v2163_v8 = vpop.eup %2162  ;;  %v1320_v10 = vsel %vm149_vm1, %v2657_v6, 0.0 }
 0xc75   :  { %1321 = vadd.xlane.f32.xlu1 %v1320_v10  ;;  %v1196_v11 = vsel %vm149_vm1, %v2163_v8, 0.0 }
 0xc76   :  { %1197 = vadd.xlane.f32.xlu2 %v1196_v11 }
 0xc7b   :  { %v1215_v13 = vpop.permute.xlu0 %1214 }
 0xc7c   :  { %1235 = vmatpush.msrb.mxu2 %v1215_v13 }
 0xc7d   :  { %1113 = vmax.xlane.f32.xlu1 %v1112_v14 }
 0xc83   :  { %v1137_v15 = vpop.permute.xlu0 %1136 }
 0xc84   :  { %1157 = vmatpush.msrb.mxu1 %v1137_v15 }
 0xc86   :  { %1258 = vmatpush.msra.mxu1 %v1082_v49 }
 0xc8b   :  { %v1389_v4 = vpop.permute.xlu0 %1388 }
 0xc8e   :  { %1338 = vrot.lane.b32.xlu2 %v2630_v54, %s2309_s0 }
 0xc96   :  { %1390 = vrot.lane.b32.xlu2 %v2630_v54, %s2836_s8 }
 0xce8   :  { %v1322_v17 = vpop.xlane.xlu1 %1321 }
 0xce9   :  { %2164 = vrcp.f32 %v1322_v17  ;;  %v1198_v18 = vpop.xlane.xlu2 %1197  ;;  %v1334_v39 = vand.u32 2147483648, %v1322_v17  ;;  %vm1328_vm12 = vweird.f32 %v1322_v17  ;;  %v1332_v42 = vand.u32 2147483647, %v1322_v17 }
 0xcea   :  { %2166 = vrcp.f32 %v1198_v18  ;;  %v1208_v29 = vand.u32 2147483647, %v1198_v18  ;;  %v1210_v31 = vand.u32 2147483648, %v1198_v18  ;;  %vm1204_vm8 = vweird.f32 %v1198_v18 }
 0xceb   :  { %v1335_v44 = vor.u32 1.1754944e-38, %v1334_v39  ;;  %vm1333_vm14 = vcmp.eq.f32.partialorder %v1332_v42, 8.507059e+37 }
 0xcec   :  { %v1211_v36 = vor.u32 1.1754944e-38, %v1210_v31  ;;  %vm1209_vm11 = vcmp.eq.f32.partialorder %v1208_v29, 8.507059e+37 }
 0xcef   :  { %v2165_v19 = vpop.eup %2164 }
 0xcf0   :  { %v2167_v9 = vpop.eup %2166  ;;  %v1324_v20 = vmul.f32 %v2165_v19, %v1322_v17  ;;  %v1114_v21 = vpop.xlane.xlu1 %1113  ;;  %vm1329_vm10 = vweird.f32 %v2165_v19 }
 0xcf1   :  { %v1200_v23 = vmul.f32 %v2167_v9, %v1198_v18  ;;  %v1115_v25 = vsub.f32 %v1109_v12, %v1114_v21  ;;  %v1339_v26 = vpop.permute.xlu2 %1338  ;;  %vm1205_vm7 = vweird.f32 %v2167_v9  ;;  %vm1330_vm13 = vmor %vm1328_vm12, %vm1329_vm10 }
 0xcf2   :  { %v1325_v27 = vsub.f32 1.0, %v1324_v20  ;;  %1359 = vmatpush.msra.mxu2 %v1339_v26  ;;  %vm1206_vm9 = vmor %vm1204_vm8, %vm1205_vm7 }
 0xcf3   :  { %v1201_v28 = vsub.f32 1.0, %v1200_v23  ;;  %v1116_v30 = vmul.f32 1.442695, %v1115_v25 }
 0xcf4   :  { %v1326_v33 = vmul.f32 %v2165_v19, %v1325_v27 }
 0xcf5   :  { %v1202_v34 = vmul.f32 %v2167_v9, %v1201_v28  ;;  %2168 = vpow2.f32 %v1116_v30 }
 0xcf6   :  { %v1327_v37 = vadd.f32 %v2165_v19, %v1326_v33 }
 0xcf7   :  { %v1203_v35 = vadd.f32 %v2167_v9, %v1202_v34 }
 0xcf8   :  { %v1331_v24 = vsel %vm1330_vm13, %v2165_v19, %v1327_v37 }
 0xcf9   :  { %v1207_v38 = vsel %vm1206_vm9, %v2167_v9, %v1203_v35  ;;  %v1391_v32 = vpop.permute.xlu2 %1390  ;;  %v1336_v45 = vsel %vm1333_vm14, %v1335_v44, %v1331_v24 }
 0xcfa   :  { %v1212_v40 = vsel %vm1209_vm11, %v1211_v36, %v1207_v38  ;;  %2078 = vmatpush.xpose.msk.msra.mxu3 %vm149_vm1, %v1391_v32  ;;  %v1337_v46 = vmul.f32 %v2657_v6, %v1336_v45 }
 0xcfb   :  { %v2169_v41 = vpop.eup %2168  ;;  %v1213_v22 = vmul.f32 %v2163_v8, %v1212_v40 }
 0xcfc   :  { %v1118_v43 = vsel %vm149_vm1, %v2169_v41, 0.0 }
 0xcfd   :  { %1119 = vadd.xlane.f32.xlu1 %v1118_v43  ;;  %2071 = vmatmul.msk.f32.vlgmr.msrb.gmra.mxu2 %vm149_vm1, %v1213_v22 }
 0xd05   :  { %2076 = vmatmul.msk.f32.vlgmr.msra.gmra.mxu2 %vm149_vm1, %v1337_v46 }
 0xd16   :  { %1496 = vrot.lane.b32.xlu1 %v2679_v48, %s2302_s20  ;;  %s2015_s20 = sshll.u32 %s2828_s17, 4  ;;  %s2016_s20 = int_to_ptr.hbm [resolvable:$true] %s2015_s20 }
 0xd1e   :  { %1546 = vrot.lane.b32.xlu1 %v2679_v48, %s2306_s2 }
 0xd70   :  { %v1120_v50 = vpop.xlane.xlu1 %1119 }
 0xd71   :  { %2170 = vrcp.f32 %v1120_v50  ;;  %v1132_v55 = vand.u32 2147483648, %v1120_v50  ;;  %v1130_v52 = vand.u32 2147483647, %v1120_v50  ;;  %vm1126_vm2 = vweird.f32 %v1120_v50 }
 0xd73   :  { %v1133_v58 = vor.u32 1.1754944e-38, %v1132_v55  ;;  %vm1131_vm4 = vcmp.eq.f32.partialorder %v1130_v52, 8.507059e+37 }
 0xd77   :  { %v2171_v7 = vpop.eup %2170 }
 0xd78   :  { %v1122_v51 = vmul.f32 %v2171_v7, %v1120_v50  ;;  %vm1127_vm15 = vweird.f32 %v2171_v7 }
 0xd79   :  { %vm1128_vm3 = vmor %vm1126_vm2, %vm1127_vm15 }
 0xd7a   :  { %v1123_v53 = vsub.f32 1.0, %v1122_v51 }
 0xd7c   :  { %v1124_v56 = vmul.f32 %v2171_v7, %v1123_v53 }
 0xd7e   :  { %v1125_v57 = vadd.f32 %v2171_v7, %v1124_v56  ;;  %v2736_v56 = vld [vmem:[%s2822_s11 + $0x18] sm:$0xff] }
 0xd7f   :  { %1484 = vmatpush.msrb.mxu2 %v2736_v56 }
 0xd80   :  { %v1129_v59 = vsel %vm1128_vm3, %v2171_v7, %v1125_v57  ;;  %v1237_v63 = vpop.f32.mrf.mxu2 }
 0xd81   :  { %v1134_v60 = vsel %vm1131_vm4, %v1133_v58, %v1129_v59 }
 0xd82   :  { %v1135_v61 = vmul.f32 %v2169_v41, %v1134_v60 }
 0xd84   :  { %2068 = vmatmul.msk.f32.vlgmr.msrb.gmra.mxu1 %vm149_vm1, %v1135_v61 }
 0xd85   :  { %1382 = vmatpush.msrb.mxu1 %v1083_v62 }
 0xd88   :  { %v1497_v0 = vpop.permute.xlu1 %1496  ;;  %v1361_v1 = vpop.f32.mrf.mxu2 }
 0xd8c   :  { %2072 = vmatmul.msk.f32.vlgmr.msra.gmra.mxu1 %vm149_vm1, %v1237_v63 }
 0xd8d   :  { %2082 = vmatpush.xpose.msk.msra.mxu1 %vm149_vm1, %v1497_v0 }
 0xd90   :  { %v1547_v3 = vpop.permute.xlu1 %1546 }
 0xd94   :  { %2077 = vmatmul.msk.f32.vlgmr.msrb.gmra.mxu1 %vm149_vm1, %v1361_v1 }
 0xd95   :  { %1668 = vmatpush.msrb.mxu1 %v1082_v49 }
 0xd9c   :  { %2083 = vmatmul.msk.f32.vlgmr.msra.gmra.mxu1 %vm149_vm1, %v2679_v48 }
 0xd9d   :  { %1792 = vmatpush.msra.mxu1 %v1083_v62 }
 0xe01   :  { %v1159_v2 = vpop.f32.mrf.mxu1 }
 0xe02   :  { %2073 = vmatmul.msk.f32.vlgmr.msrb.gmra.mxu3 %vm149_vm1, %v1159_v2 }
 0xe03   :  { %1567 = vmatpush.msrb.mxu3 %v1547_v3 }
 0xe09   :  { %v2698_v5 = vpop.f32.mrf.mxu1 }
 0xe0a   :  { %2079 = vmatmul.msk.f32.vlgmr.msra.gmra.mxu3 %vm149_vm1, %v1389_v4 }
 0xe0b   :  { %1691 = vmatpush.msra.mxu3 %v2670_v16 }
 0xe11   :  { %v2702_v6 = vpop.f32.mrf.mxu1 }
 0xe19   :  { %v1519_v8 = vpop.f32.mrf.mxu1 }
 0xe1a   :  { %v1522_v10 = vsel %vm149_vm1, %v1519_v8, -inf }
 0xe1b   :  { %1523 = vmax.xlane.f32.xlu2 %v1522_v10 }
 0xe85   :  { %v2705_v11 = vpop.f32.mrf.mxu3 }
 0xe8d   :  { %v1413_v12 = vpop.f32.mrf.mxu3 }
 0xe8e   :  { %v1524_v13 = vpop.xlane.xlu2 %1523  ;;  %v1416_v14 = vsel %vm149_vm1, %v1413_v12, -inf }
 0xe8f   :  { %v1525_v15 = vsub.f32 %v1519_v8, %v1524_v13  ;;  %1417 = vmax.xlane.f32.xlu1 %v1416_v14 }
 0xe91   :  { %v1526_v17 = vmul.f32 1.442695, %v1525_v15 }
 0xe93   :  { %2172 = vpow2.f32 %v1526_v17 }
 0xe99   :  { %v2173_v18 = vpop.eup %2172 }
 0xe9a   :  { %v1528_v19 = vsel %vm149_vm1, %v2173_v18, 0.0 }
 0xe9b   :  { %1529 = vadd.xlane.f32.xlu0 %v1528_v19 }
 0xea8   :  { %1800 = vrot.lane.b32.xlu1 %v2679_v48, %s2836_s8 }
 0xeaf   :  { %1440 = vrot.lane.b32.xlu0 %v2630_v54, %s2311_s19 }
 0xeb7   :  { %1572 = vrot.lane.b32.xlu0 %v2679_v48, %s2301_s1 }
 0xebf   :  { %1698 = vrot.lane.b32.xlu0 %v2679_v48, %s2308_s25 }
 0xf02   :  { %v1418_v16 = vpop.xlane.xlu1 %1417 }
 0xf03   :  { %v1419_v9 = vsub.f32 %v1413_v12, %v1418_v16 }
 0xf05   :  { %v1420_v20 = vmul.f32 1.442695, %v1419_v9 }
 0xf07   :  { %2174 = vpow2.f32 %v1420_v20 }
 0xf0d   :  { %v2175_v21 = vpop.eup %2174 }
 0xf0e   :  { %v1530_v23 = vpop.xlane.xlu0 %1529  ;;  %v1422_v25 = vsel %vm149_vm1, %v2175_v21, 0.0 }
 0xf0f   :  { %2176 = vrcp.f32 %v1530_v23  ;;  %1423 = vadd.xlane.f32.xlu2 %v1422_v25  ;;  %v1542_v54 = vand.u32 2147483648, %v1530_v23  ;;  %v1540_v29 = vand.u32 2147483647, %v1530_v23  ;;  %vm1536_vm7 = vweird.f32 %v1530_v23 }
 0xf11   :  { %v1543_v33 = vor.u32 1.1754944e-38, %v1542_v54  ;;  %vm1541_vm9 = vcmp.eq.f32.partialorder %v1540_v29, 8.507059e+37 }
 0xf15   :  { %v2177_v26 = vpop.eup %2176 }
 0xf16   :  { %v1532_v27 = vmul.f32 %v2177_v26, %v1530_v23  ;;  %vm1537_vm5 = vweird.f32 %v2177_v26 }
 0xf17   :  { %vm1538_vm8 = vmor %vm1536_vm7, %vm1537_vm5 }
 0xf18   :  { %v1533_v28 = vsub.f32 1.0, %v1532_v27 }
 0xf1a   :  { %v1534_v30 = vmul.f32 %v2177_v26, %v1533_v28  ;;  %v1801_v38 = vpop.permute.xlu1 %1800 }
 0xf1c   :  { %v1535_v31 = vadd.f32 %v2177_v26, %v1534_v30 }
 0xf1e   :  { %v1539_v34 = vsel %vm1538_vm8, %v2177_v26, %v1535_v31 }
 0xf1f   :  { %v1544_v35 = vsel %vm1541_vm9, %v1543_v33, %v1539_v34 }
 0xf20   :  { %v1545_v36 = vmul.f32 %v2173_v18, %v1544_v35 }
 0xf21   :  { %v1441_v37 = vpop.permute.xlu0 %1440 }
 0xf22   :  { %1461 = vmatpush.msra.mxu0 %v1441_v37  ;;  %2084 = vmatmul.msk.f32.vlgmr.msrb.gmra.mxu3 %vm149_vm1, %v1545_v36 }
 0xf23   :  { %2094 = vmatpush.xpose.msk.msrb.mxu3 %vm149_vm1, %v1801_v38 }
 0xf27   :  { %1574 = vrot.lane.b32.xlu2 %v2679_v48, %s2303_s21 }
 0xf29   :  { %v1573_v42 = vpop.permute.xlu0 %1572 }
 0xf2f   :  { %1798 = vrot.lane.b32.xlu2 %v2679_v48, %s2310_s30 }
 0xf31   :  { %v1699_v7 = vpop.permute.xlu0 %1698 }
 0xf37   :  { %1696 = vrot.lane.b32.xlu2 %v2679_v48, %s2304_s22 }
 0xf82   :  { %v1424_v32 = vpop.xlane.xlu2 %1423 }
 0xf83   :  { %2178 = vrcp.f32 %v1424_v32  ;;  %v1436_v43 = vand.u32 2147483648, %v1424_v32  ;;  %v1434_v44 = vand.u32 2147483647, %v1424_v32  ;;  %vm1430_vm11 = vweird.f32 %v1424_v32 }
 0xf85   :  { %v1437_v46 = vor.u32 1.1754944e-38, %v1436_v43  ;;  %vm1435_vm13 = vcmp.eq.f32.partialorder %v1434_v44, 8.507059e+37 }
 0xf89   :  { %v2179_v39 = vpop.eup %2178 }
 0xf8a   :  { %v1426_v40 = vmul.f32 %v2179_v39, %v1424_v32  ;;  %v1575_v41 = vpop.permute.xlu2 %1574  ;;  %vm1431_vm10 = vweird.f32 %v2179_v39 }
 0xf8b   :  { %2085 = vmatpush.xpose.msk.msrb.mxu0 %vm149_vm1, %v1575_v41  ;;  %vm1432_vm12 = vmor %vm1430_vm11, %vm1431_vm10 }
 0xf8c   :  { %v1427_v22 = vsub.f32 1.0, %v1426_v40 }
 0xf8e   :  { %v1428_v24 = vmul.f32 %v2179_v39, %v1427_v22 }
 0xf90   :  { %v1429_v45 = vadd.f32 %v2179_v39, %v1428_v24 }
 0xf92   :  { %v1433_v47 = vsel %vm1432_vm12, %v2179_v39, %v1429_v45  ;;  %v1799_v51 = vpop.permute.xlu2 %1798 }
 0xf93   :  { %v1438_v49 = vsel %vm1435_vm13, %v1437_v46, %v1433_v47 }
 0xf94   :  { %v1439_v50 = vmul.f32 %v2175_v21, %v1438_v49 }
 0xf96   :  { %2080 = vmatmul.msk.f32.vlgmr.msra.gmra.mxu0 %vm149_vm1, %v1439_v50 }
 0xf97   :  { %2090 = vmatpush.xpose.msk.msra.mxu0 %vm149_vm1, %v1699_v7 }
 0xf9a   :  { %v1697_v53 = vpop.permute.xlu2 %1696 }
 0xf9e   :  { %2086 = vmatmul.msk.f32.vlgmr.msrb.gmra.mxu0 %vm149_vm1, %v1573_v42 }
 0xfa5   :  { %v1569_v55 = vpop.f32.mrf.mxu3 }
 0xfa6   :  { %2089 = vmatmul.msk.f32.vlgmr.msra.gmra.mxu3 %vm149_vm1, %v1569_v55  ;;  %2091 = vmatmul.msk.f32.vlgmr.msra.gmra.mxu0 %vm149_vm1, %v1697_v53 }
 0xfae   :  { %2095 = vmatmul.msk.f32.vlgmr.msrb.gmra.mxu3 %vm149_vm1, %v1799_v51 }
0x1013   :  { %v1463_v52 = vpop.f32.mrf.mxu0 }
0x1014   :  { %2081 = vmatmul.msk.f32.vlgmr.msrb.gmra.mxu2 %vm149_vm1, %v1463_v52 }
0x101b   :  { %v1597_v57 = vpop.f32.mrf.mxu0 }
0x101c   :  { %v1600_v58 = vsel %vm149_vm1, %v1597_v57, -inf }
0x101d   :  { %1601 = vmax.xlane.f32.xlu0 %v1600_v58  ;;  %v1904_v58 = vld [vmem:[#allocation7 + $0x18] sm:$0xff] }
0x1023   :  { %v1721_v59 = vpop.f32.mrf.mxu0 }
0x1024   :  { %v1724_v60 = vsel %vm149_vm1, %v1721_v59, -inf }
0x1025   :  { %1725 = vmax.xlane.f32.xlu2 %v1724_v60  ;;  %v1903_v60 = vld [vmem:[#allocation7 + $0x10] sm:$0xff] }
0x1029   :  { %v2742_v61 = vpop.f32.mrf.mxu3 }
0x1031   :  { %v1823_v62 = vpop.f32.mrf.mxu3 }
0x1032   :  { %v1826_v63 = vsel %vm149_vm1, %v1823_v62, -inf }
0x1033   :  { %1827 = vmax.xlane.f32.xlu1 %v1826_v63  ;;  %v1284_v63 = vadd.f32 %v2705_v11, %v2698_v5  ;;  %v1947_v5 = vld [vmem:[%s2826_s15 + $0x38] sm:$0xff]  ;;  %v1945_v11 = vld [vmem:[%s2826_s15 + $0x28] sm:$0xff] }
0x1034   :  { %1966 = vmatpush.msra.mxu3 %v1947_v5 }
0x104c   :  { %1624 = vrot.lane.b32.xlu1 %v2679_v48, %s2307_s24 }
0x1090   :  { %v1602_v0 = vpop.xlane.xlu0 %1601 }
0x1091   :  { %v1603_v1 = vsub.f32 %v1597_v57, %v1602_v0  ;;  %v1901_v0 = vld [vmem:[#allocation7] sm:$0xff] }
0x1093   :  { %v1604_v2 = vmul.f32 1.442695, %v1603_v1 }
0x1095   :  { %2180 = vpow2.f32 %v1604_v2  ;;  %v1387_v2 = vadd.f32 %v2702_v6, %v1284_v63  ;;  %v1946_v6 = vld [vmem:[%s2826_s15 + $0x30] sm:$0xff] }
0x1096   :  { %1967 = vmatpush.msra.mxu3 %v1946_v6 }
0x1097   :  { %v1486_v57 = vpop.f32.mrf.mxu2 }
0x1098   :  { %v1726_v3 = vpop.xlane.xlu2 %1725  ;;  %1968 = vmatpush.msra.mxu3 %v1945_v11 }
0x1099   :  { %v1727_v4 = vsub.f32 %v1721_v59, %v1726_v3  ;;  %v1489_v3 = vadd.f32 %v1486_v57, %v1387_v2 }
0x109b   :  { %v2181_v8 = vpop.eup %2180  ;;  %v1728_v10 = vmul.f32 1.442695, %v1727_v4  ;;  %v2125_v4 = vld [vmem:[%s2823_s12] ss:$0 sm:$0xff] }
0x109c   :  { %v1606_v12 = vsel %vm149_vm1, %v2181_v8, 0.0 }
0x109d   :  { %2182 = vpow2.f32 %v1728_v10  ;;  %1607 = vadd.xlane.f32.xlu0 %v1606_v12  ;;  %v1944_v12 = vld [vmem:[%s2826_s15 + $0x20] sm:$0xff] }
0x109e   :  { %1969 = vmatpush.msra.mxu3 %v1944_v12 }
0x10a3   :  { %v2183_v13 = vpop.eup %2182 }
0x10a4   :  { %v1730_v14 = vsel %vm149_vm1, %v2183_v13, 0.0 }
0x10a5   :  { %1731 = vadd.xlane.f32.xlu2 %v1730_v14  ;;  %v1942_v14 = vld [vmem:[%s2826_s15 + $0x10] sm:$0xff] }
0x10a6   :  { %v1828_v15 = vpop.xlane.xlu1 %1827 }
0x10a7   :  { %v1829_v17 = vsub.f32 %v1823_v62, %v1828_v15  ;;  %v1902_v62 = vld [vmem:[#allocation7 + $0x8] sm:$0xff]  ;;  %v1941_v15 = vld [vmem:[%s2826_s15 + $0x8] sm:$0xff] }
0x10a9   :  { %v1830_v18 = vmul.f32 1.442695, %v1829_v17  ;;  %v1940_v17 = vld [vmem:[%s2826_s15] sm:$0xff] }
0x10ab   :  { %2184 = vpow2.f32 %v1830_v18 }
0x10b1   :  { %v2749_v19 = vpop.eup %2184 }
0x10b2   :  { %v1832_v16 = vsel %vm149_vm1, %v2749_v19, 0.0 }
0x10b3   :  { %1833 = vadd.xlane.f32.xlu0 %v1832_v16  ;;  %v2126_v16 = vld [vmem:[%s2825_s14] ss:$0 sm:$0xff] }
0x10bd   :  { %1748 = vrot.lane.b32.xlu2 %v2679_v48, %s2309_s0 }
0x10be   :  { %v1625_v9 = vpop.permute.xlu1 %1624 }
0x10bf   :  { %1645 = vmatpush.msra.mxu2 %v1625_v9 }
0x10c7   :  { %1850 = vrot.lane.b32.xlu0 %v2679_v48, %s2311_s19 }
0x1110   :  { %v1608_v20 = vpop.xlane.xlu0 %1607 }
0x1111   :  { %2186 = vrcp.f32 %v1608_v20  ;;  %v1620_v27 = vand.u32 2147483648, %v1608_v20  ;;  %v1618_v54 = vand.u32 2147483647, %v1608_v20  ;;  %vm1614_vm15 = vweird.f32 %v1608_v20 }
0x1113   :  { %v1621_v31 = vor.u32 1.1754944e-38, %v1620_v27  ;;  %vm1619_vm3 = vcmp.eq.f32.partialorder %v1618_v54, 8.507059e+37 }
0x1117   :  { %v2187_v21 = vpop.eup %2186 }
0x1118   :  { %v1610_v23 = vmul.f32 %v2187_v21, %v1608_v20  ;;  %v1732_v25 = vpop.xlane.xlu2 %1731  ;;  %vm1615_vm14 = vweird.f32 %v2187_v21 }
0x1119   :  { %2188 = vrcp.f32 %v1732_v25  ;;  %vm1616_vm2 = vmor %vm1614_vm15, %vm1615_vm14  ;;  %v1744_v38 = vand.u32 2147483648, %v1732_v25  ;;  %v1742_v39 = vand.u32 2147483647, %v1732_v25  ;;  %vm1738_vm5 = vweird.f32 %v1732_v25 }
0x111a   :  { %v1611_v26 = vsub.f32 1.0, %v1610_v23 }
0x111b   :  { %v1745_v42 = vor.u32 1.1754944e-38, %v1744_v38  ;;  %vm1743_vm8 = vcmp.eq.f32.partialorder %v1742_v39, 8.507059e+37 }
0x111c   :  { %v1612_v28 = vmul.f32 %v2187_v21, %v1611_v26 }
0x111e   :  { %v1613_v30 = vadd.f32 %v2187_v21, %v1612_v28 }
0x111f   :  { %v2189_v29 = vpop.eup %2188 }
0x1120   :  { %v1617_v33 = vsel %vm1616_vm2, %v2187_v21, %v1613_v30  ;;  %v1734_v34 = vmul.f32 %v2189_v29, %v1732_v25  ;;  %v1749_v48 = vpop.permute.xlu2 %1748  ;;  %vm1739_vm4 = vweird.f32 %v2189_v29 }
0x1121   :  { %v1622_v35 = vsel %vm1619_vm3, %v1621_v31, %v1617_v33  ;;  %1769 = vmatpush.msrb.mxu2 %v1749_v48  ;;  %vm1740_vm7 = vmor %vm1738_vm5, %vm1739_vm4  ;;  %v2127_v31 = vld [vmem:[%s2827_s16] ss:$0 sm:$0xff]  ;;  %s2313_s16 = smov [#allocation8]  }
0x1122   :  { %v1735_v36 = vsub.f32 1.0, %v1734_v34  ;;  %v1623_v37 = vmul.f32 %v2181_v8, %v1622_v35  ;;  %v1494_v8 = vadd.f32 %v2125_v4, %v1489_v3  ;;  %s2013_s27 = sshll.u32 %s2313_s16, 4  ;;  %s2014_s27 = int_to_ptr.vmem [resolvable:$true] %s2013_s27 }
0x1124   :  { %v1736_v32 = vmul.f32 %v2189_v29, %v1735_v36  ;;  %2087 = vmatmul.msk.f32.vlgmr.msra.gmra.mxu2 %vm149_vm1, %v1623_v37 }
0x1125   :  { %1894 = vmatpush.msra.mxu2 %v2736_v56 }
0x1126   :  { %v1737_v40 = vadd.f32 %v2189_v29, %v1736_v32  ;;  %v1834_v41 = vpop.xlane.xlu0 %1833 }
0x1127   :  { %2190 = vrcp.f32 %v1834_v41  ;;  %v1846_v47 = vand.u32 2147483648, %v1834_v41  ;;  %v1844_v50 = vand.u32 2147483647, %v1834_v41  ;;  %vm1840_vm10 = vweird.f32 %v1834_v41 }
0x1128   :  { %v1741_v22 = vsel %vm1740_vm7, %v2189_v29, %v1737_v40 }
0x1129   :  { %v1746_v43 = vsel %vm1743_vm8, %v1745_v42, %v1741_v22  ;;  %v1847_v51 = vor.u32 1.1754944e-38, %v1846_v47  ;;  %vm1845_vm12 = vcmp.eq.f32.partialorder %v1844_v50, 8.507059e+37 }
0x112a   :  { %v1747_v24 = vmul.f32 %v2183_v13, %v1746_v43  ;;  %v1943_v13 = vld [vmem:[%s2826_s15 + $0x18] sm:$0xff] }
0x112b   :  { %1970 = vmatpush.msra.mxu3 %v1943_v13 }
0x112c   :  { %2092 = vmatmul.msk.f32.vlgmr.msrb.gmra.mxu2 %vm149_vm1, %v1747_v24 }
0x112d   :  { %v2191_v44 = vpop.eup %2190  ;;  %1971 = vmatpush.msra.mxu3 %v1942_v14 }
0x112e   :  { %v1836_v45 = vmul.f32 %v2191_v44, %v1834_v41  ;;  %vm1841_vm9 = vweird.f32 %v2191_v44 }
0x112f   :  { %vm1842_vm11 = vmor %vm1840_vm10, %vm1841_vm9  ;;  %1972 = vmatpush.msra.mxu3 %v1941_v15 }
0x1130   :  { %v1837_v46 = vsub.f32 1.0, %v1836_v45 }
0x1131   :  { %1973 = vmatpush.msra.mxu3 %v1940_v17 }
0x1132   :  { %v1838_v49 = vmul.f32 %v2191_v44, %v1837_v46 }
0x1134   :  { %v1839_v7 = vadd.f32 %v2191_v44, %v1838_v49 }
0x1136   :  { %v1843_v53 = vsel %vm1842_vm11, %v2191_v44, %v1839_v7 }
0x1137   :  { %v1848_v55 = vsel %vm1845_vm12, %v1847_v51, %v1843_v53 }
0x1138   :  { %v1849_v56 = vmul.f32 %v2749_v19, %v1848_v55 }
0x1139   :  { %v1851_v52 = vpop.permute.xlu0 %1850 }
0x113a   :  { %1871 = vmatpush.msrb.mxu0 %v1851_v52 }
0x113b   :  { %2096 = vmatmul.msk.f32.vlgmr.msrb.gmra.mxu0 %vm149_vm1, %v1849_v56 }
0x11a7   :  { %v1647_v59 = vpop.f32.mrf.mxu2 }
0x11a8   :  { %2088 = vmatmul.msk.f32.vlgmr.msrb.gmra.mxu1 %vm149_vm1, %v1647_v59 }
0x11a9   :  { %1927 = vmatpush.msrb.mxu1 %v1904_v58 }
0x11ab   :  { %1928 = vmatpush.msrb.mxu1 %v1903_v60 }
0x11ad   :  { %1929 = vmatpush.msrb.mxu1 %v1902_v62 }
0x11af   :  { %v1771_v1 = vpop.f32.mrf.mxu2  ;;  %1930 = vmatpush.msrb.mxu1 %v1901_v0 }
0x11b0   :  { %2093 = vmatmul.msk.f32.vlgmr.msra.gmra.mxu1 %vm149_vm1, %v1771_v1 }
0x11b8   :  { %v1873_v10 = vpop.f32.mrf.mxu0  ;;  %2098 = vmatmul.msk.f32.vlgmr.msrb.gmra.mxu1 %vm112_vm0, %v1494_v8 }
0x11b9   :  { %2097 = vmatmul.msk.f32.vlgmr.msra.gmra.mxu2 %vm149_vm1, %v1873_v10 }
0x1225   :  { %v1670_v18 = vpop.f32.mrf.mxu1 }
0x1226   :  { %v1694_v23 = vadd.f32 %v2742_v61, %v1670_v18  ;;  %v2312_v61 = vmov 8.0  }
0x1227   :  { %2192 = vrcp.f32 %v2312_v61 }
0x122d   :  { %v1794_v19 = vpop.f32.mrf.mxu1  ;;  %v2193_v36 = vpop.eup %2192 }
0x122e   :  { %v1797_v25 = vadd.f32 %v1794_v19, %v1694_v23  ;;  %v1989_v38 = vmul.f32 8.0, %v2193_v36  ;;  %vm1993_vm1 = vweird.f32 %v2193_v36 }
0x1230   :  { %v1990_v40 = vsub.f32 1.0, %v1989_v38 }
0x1232   :  { %v1991_v24 = vmul.f32 %v2193_v36, %v1990_v40 }
0x1234   :  { %v1992_v47 = vadd.f32 %v2193_v36, %v1991_v24 }
0x1235   :  { %v1932_v9 = vpop.f32.mrf.mxu1 }
0x1236   :  { %v1933_v20 = vadd.f32 %v2126_v16, %v1932_v9  ;;  %v1994_v51 = vsel %vm1993_vm1, %v2193_v36, %v1992_v47 }
0x1238   :  { %v1938_v21 = vmax.f32 %v1933_v20, 0.0 }
0x123a   :  { %2100 = vmatmul.msk.f32.vlgmr.msra.gmra.mxu3 %vm1014_vm6, %v1938_v21 }
0x123c   :  { %v1896_v26 = vpop.f32.mrf.mxu2 }
0x123d   :  { %v1899_v27 = vadd.f32 %v1896_v26, %v1797_v25 }
0x123f   :  { %v1900_v28 = vadd.f32 %v2125_v4, %v1899_v27 }
0x1241   :  { %2099 = vmatmul.msk.f32.gmra.mxu1 %vm112_vm0, %v1900_v28 }
0x12bd   :  { %v1975_v33 = vpop.f32.mrf.mxu3 }
0x12be   :  { %v1935_v54 = vpop.f32.mrf.mxu1  ;;  %v1976_v34 = vadd.f32 %v2127_v31, %v1975_v33 }
0x12bf   :  { %v1936_v30 = vadd.f32 %v2126_v16, %v1935_v54 }
0x12c0   :  { %v1981_v48 = vsel %vm112_vm0, %v1976_v34, 0.0 }
0x12c1   :  { %v1939_v29 = vmax.f32 %v1936_v30, 0.0  ;;  %v1982_v35 = vrot.slane %v1981_v48, 4 }
0x12c3   :  { %2101 = vmatmul.msk.f32.gmra.mxu3 %vm1014_vm6, %v1939_v29  ;;  %v1983_v37 = vadd.f32 %v1982_v35, %v1981_v48  ;;  %vm2006_vm6 = vcmask 254976  }
0x12c5   :  { %v1984_v32 = vrot.slane %v1983_v37, 2 }
0x12c7   :  { %v1985_v22 = vadd.f32 %v1984_v32, %v1983_v37 }
0x12c9   :  { %v1986_v45 = vrot.slane %v1985_v22, 1 }
0x12cb   :  { %v1987_v50 = vadd.f32 %v1986_v45, %v1985_v22 }
0x12cd   :  { %v1995_v55 = vmul.f32 %v1994_v51, %v1987_v50 }
0x1346   :  { %v1978_v39 = vpop.f32.mrf.mxu3 }
0x1347   :  { %v1979_v41 = vadd.f32 %v2127_v31, %v1978_v39 }
0x1349   :  { %v1996_v42 = vsel %vm112_vm0, %v1979_v41, 0.0  ;;  %vm2004_vm0 = vcmask 1040384  }
0x134a   :  { %v1997_v43 = vrot.slane %v1996_v42, 4 }
0x134c   :  { %v1998_v44 = vadd.f32 %v1997_v43, %v1996_v42 }
0x134e   :  { %v1999_v46 = vrot.slane %v1998_v44, 2 }
0x1350   :  { %v2000_v49 = vadd.f32 %v1999_v46, %v1998_v44 }
0x1352   :  { %v2001_v7 = vrot.slane %v2000_v49, 1 }
0x1354   :  { %v2002_v53 = vadd.f32 %v2001_v7, %v2000_v49 }
0x1356   :  { %v2003_v56 = vmul.f32 %v2002_v53, %v1994_v51 }
0x1358   :  { %v2005_v52 = vsel %vm2004_vm0, %v1995_v55, %v2003_v56 }
0x1359   :  { %2007 = vst.msk [vmem:[#allocation8] sm:$0x3] %vm2006_vm6, %v2005_v52 }
0x135a   :  { %2018 = dma.vmem_to_hbm [thread:$0]  %s2014_s27, 32, %s2016_s20, [#allocation4]  }
0x135b   :  { %2294 = dma.done.wait [#allocation4], 32  }
0x135c   :  { %2295 = vsyncadd [#allocation4], 4294967264 }
0x135d   :  { %2023 = vsyncpa [#allocation3], 1 }
0x135e   :  { %2024 = vsyncpa [#allocation6], 1 }
0x135f   :  { %2025 = vsyncpa [#allocation4], 1 }

</bundles_post_ra>
